<compile_context>
chip_gen: v5e
topology: v5e:2x2
jax: 0.10.0
libtpu: 0.0.40
codegen_flags: <defaults>
</compile_context>

<pallas_src>
import functools

import jax
import jax.numpy as jnp
import numpy as np
from jax.experimental import pallas as pl
from jax.experimental.pallas import tpu as pltpu


def _round_up(x, m):
    return ((x + m - 1) // m) * m


# -----------------------------------------------------------------------------
# Fused (both-direction) LSTM elementwise update.
#   gates: (Bp, 8*Hp) with layout [i_f i_b | f_f f_b | g_f g_b | o_f o_b]
#   c    : (Bp, 2*Hp) with layout [c_f | c_b]
# Each gate group is 2*Hp lanes (a multiple of 128) => vreg-aligned slices.
# -----------------------------------------------------------------------------
def _fused_lstm_update(gates, c, hp2):
    i_g = jax.nn.sigmoid(gates[:, 0 * hp2:1 * hp2])
    f_g = jax.nn.sigmoid(gates[:, 1 * hp2:2 * hp2])
    g_g = jnp.tanh(gates[:, 2 * hp2:3 * hp2])
    o_g = jax.nn.sigmoid(gates[:, 3 * hp2:4 * hp2])
    c_new = f_g * c + i_g * g_g
    h_new = o_g * jnp.tanh(c_new)
    return h_new, c_new


# -----------------------------------------------------------------------------
# Encoder: one pallas_call, grid=(T // Tc,), Tc timesteps per grid step.
# Input gate pre-activations (x @ W_ih, both directions) are precomputed in
# the wrapper; the kernel only runs the serial h @ W_hh recurrence.
# Outputs (h, c) are resident accumulators (constant output block index).
# -----------------------------------------------------------------------------
def _encoder_kernel(gin_ref, whh_ref, b_ref, h_ref, c_ref, *, t_chunk):
    @pl.when(pl.program_id(0) == 0)
    def _():
        h_ref[...] = jnp.zeros_like(h_ref)
        c_ref[...] = jnp.zeros_like(c_ref)

    whh = whh_ref[...]          # (2*Hp, 8*Hp) bf16, resident in VMEM
    b = b_ref[...]              # (1, 8*Hp) f32
    hp2 = h_ref.shape[-1]

    def step(j, carry):
        h, c = carry
        gates = (gin_ref[j]     # (Bp, 8*Hp) f32, precomputed input projection
                 + jnp.dot(h.astype(jnp.bfloat16), whh,
                           preferred_element_type=jnp.float32)
                 + b)
        return _fused_lstm_update(gates, c, hp2)

    h, c = jax.lax.fori_loop(0, t_chunk, step, (h_ref[...], c_ref[...]),
                             unroll=True)
    h_ref[...] = h
    c_ref[...] = c


def _encode(params, gates_in):
    """gates_in: (T, Bp, 8*Hp) f32, time-major fused gate pre-activations."""
    T, Bp, G = gates_in.shape
    Hp2 = 2 * params["Hp"]
    t_chunk = next(d for d in (16, 8, 4, 2, 1) if T % d == 0)

    kernel = functools.partial(_encoder_kernel, t_chunk=t_chunk)
    return pl.pallas_call(
        kernel,
        out_shape=(jax.ShapeDtypeStruct((Bp, Hp2), jnp.float32),
                   jax.ShapeDtypeStruct((Bp, Hp2), jnp.float32)),
        grid_spec=pltpu.PrefetchScalarGridSpec(
            num_scalar_prefetch=0,
            grid=(T // t_chunk,),
            in_specs=[
                pl.BlockSpec((t_chunk, Bp, G), lambda t: (t, 0, 0)),  # streamed
                pl.BlockSpec((Hp2, G), lambda t: (0, 0)),             # W_hh once
                pl.BlockSpec((1, G), lambda t: (0, 0)),               # bias once
            ],
            out_specs=(pl.BlockSpec((Bp, Hp2), lambda t: (0, 0)),
                       pl.BlockSpec((Bp, Hp2), lambda t: (0, 0))),
        ),
        compiler_params=pltpu.CompilerParams(
            dimension_semantics=("arbitrary",)),    # recurrence: sequential
    )(gates_in, params["enc_whh"], params["enc_b"])


# -----------------------------------------------------------------------------
# Decoder: one pallas_call, grid=(max_loop,).  State (h, c, one-hot feedback)
# persists in VMEM scratch; the (1, Bp, Vp) log-softmax output block is
# streamed per step; post-EOS steps are predicated off.
# -----------------------------------------------------------------------------
def _decoder_kernel(h0_ref, c0_ref, x0_ref,
                    wih_ref, whh_ref, b_ref, wout_ref, bout_ref,
                    out_ref, nsteps_ref,
                    h_sc, c_sc, x_sc,
                    *, n_real_batch, eos_idx):
    step = pl.program_id(0)
    max_loop = pl.num_programs(0)
    Bp, Vp = x_sc.shape
    hp2 = h_sc.shape[-1]

    @pl.when(step == 0)
    def _():
        h_sc[...] = h0_ref[...]
        c_sc[...] = c0_ref[...]
        x_sc[...] = x0_ref[...]
        nsteps_ref[0] = jnp.int32(max_loop)     # sentinel: "no EOS yet"

    # Reference semantics stop after the first step on which ANY real batch
    # row predicts EOS; once that happened, skip all remaining compute
    # (trailing output blocks are discarded by the host-side trim).
    @pl.when(nsteps_ref[0] == max_loop)
    def _():
        h, c, x = h_sc[...], c_sc[...], x_sc[...]
        # F.relu on a one-hot input is a no-op -> dropped.
        gates = (jnp.dot(x.astype(jnp.bfloat16), wih_ref[...],
                         preferred_element_type=jnp.float32)
                 + jnp.dot(h.astype(jnp.bfloat16), whh_ref[...],
                           preferred_element_type=jnp.float32)
                 + b_ref[...])
        h_new, c_new = _fused_lstm_update(gates, c, hp2)

        # Output linear on [h_f | h_b]; padded vocab lanes carry a -1e30 bias
        # so they never win argmax and have zero softmax mass.
        logits = (jnp.dot(h_new.astype(jnp.bfloat16), wout_ref[...],
                          preferred_element_type=jnp.float32)
                  + bout_ref[...])                       # (Bp, Vp) f32

        # Fused row-wise log-softmax.
        m = jnp.max(logits, axis=-1, keepdims=True)
        s = logits - m
        lse = jnp.log(jnp.sum(jnp.exp(s), axis=-1, keepdims=True))
        out_ref[0] = s - lse

        # Greedy argmax (lowest index on ties, like torch.topk) + one-hot feedback.
        col_ids = jax.lax.broadcasted_iota(jnp.int32, (Bp, Vp), 1)
        cand = jnp.where(logits == m, col_ids, Vp)
        amax = jnp.min(cand, axis=-1, keepdims=True)     # (Bp, 1) int32
        x_sc[...] = (col_ids == amax).astype(jnp.float32)
        h_sc[...] = h_new
        c_sc[...] = c_new

        # EOS detection on real batch rows only (padded rows masked out).
        row_ids = jax.lax.broadcasted_iota(jnp.int32, (Bp, 1), 0)
        hit = jnp.sum(((amax == eos_idx) & (row_ids < n_real_batch))
                      .astype(jnp.int32))

        @pl.when(hit > 0)
        def _():
            nsteps_ref[0] = (step + 1).astype(jnp.int32)


def _decode(params, h0, c0, sos_onehot, *, n_real_batch, eos_idx, max_loop):
    Bp, Hp2 = h0.shape
    Vp = sos_onehot.shape[-1]
    G = 4 * Hp2

    kernel = functools.partial(_decoder_kernel,
                               n_real_batch=n_real_batch, eos_idx=eos_idx)

    def const2(i):
        return (0, 0)

    return pl.pallas_call(
        kernel,
        out_shape=(jax.ShapeDtypeStruct((max_loop, Bp, Vp), jnp.float32),
                   jax.ShapeDtypeStruct((1,), jnp.int32)),
        grid_spec=pltpu.PrefetchScalarGridSpec(
            num_scalar_prefetch=0,
            grid=(max_loop,),
            in_specs=[
                pl.BlockSpec((Bp, Hp2), const2),     # h0  (encoder final)
                pl.BlockSpec((Bp, Hp2), const2),     # c0
                pl.BlockSpec((Bp, Vp), const2),      # SOS one-hot
                pl.BlockSpec((Vp, G), const2),       # W_ih (fused dirs, bf16)
                pl.BlockSpec((Hp2, G), const2),      # W_hh (block-diag, bf16)
                pl.BlockSpec((1, G), const2),        # LSTM bias (f32)
                pl.BlockSpec((Hp2, Vp), const2),     # out linear W (bf16)
                pl.BlockSpec((1, Vp), const2),       # out bias (-1e30 pads)
            ],
            out_specs=(
                pl.BlockSpec((1, Bp, Vp), lambda i: (i, 0, 0)),   # streamed
                pl.BlockSpec(memory_space=pltpu.MemorySpace.SMEM),  # nsteps
            ),
            scratch_shapes=[
                pltpu.VMEM((Bp, Hp2), jnp.float32),   # h state
                pltpu.VMEM((Bp, Hp2), jnp.float32),   # c state
                pltpu.VMEM((Bp, Vp), jnp.float32),    # one-hot feedback
            ],
        ),
        compiler_params=pltpu.CompilerParams(
            dimension_semantics=("arbitrary",)),
    )(h0, c0, sos_onehot,
      params["dec_wih"], params["dec_whh"], params["dec_b"],
      params["out_w"], params["out_b"])


# -----------------------------------------------------------------------------
# Parameters (deterministic, PyTorch-default-style uniform init), stored in
# kernel-ready fused / padded / bf16 layouts.
#
# Gate layout (8*Hp lanes): [i_f i_b | f_f f_b | g_f g_b | o_f o_b], each
# per-direction block padded from H to Hp.  State layout: [h_f | h_b] (2*Hp).
# -----------------------------------------------------------------------------
def init_params(key, input_size, hidden_size, output_size, *, d_pad, v_pad, h_pad):
    H, Hp = hidden_size, h_pad
    assert Hp >= H and (2 * Hp) % 128 == 0
    G = 8 * Hp
    keys = iter(jax.random.split(key, 24))

    def uni(shape, bound):
        return jax.random.uniform(next(keys), shape, jnp.float32, -bound, bound)

    k_lstm = float(1.0 / np.sqrt(H))

    def raw_lstm_dir(in_dim):
        w_ih = uni((4 * H, in_dim), k_lstm)                 # PyTorch (4H, in)
        w_hh = uni((4 * H, H), k_lstm)
        b = uni((4 * H,), k_lstm) + uni((4 * H,), k_lstm)   # b_ih + b_hh
        return w_ih, w_hh, b

    def pack_ih_dir(w_ih, in_dim, in_pad):
        # (4H, in) -> (in_pad, 4*Hp): per-gate blocks padded to Hp lanes.
        w = jnp.zeros((in_pad, 4 * Hp), jnp.float32)
        for g in range(4):
            w = w.at[:in_dim, g * Hp:g * Hp + H].set(w_ih[g * H:(g + 1) * H, :].T)
        return w.astype(jnp.bfloat16)

    def pack_ih_fused(w_ih_f, w_ih_b, in_dim, in_pad):
        # Both directions into one (in_pad, 8*Hp) matrix (same input x).
        w = jnp.zeros((in_pad, G), jnp.float32)
        for g in range(4):
            w = w.at[:in_dim, g * 2 * Hp:g * 2 * Hp + H].set(
                w_ih_f[g * H:(g + 1) * H, :].T)
            w = w.at[:in_dim, g * 2 * Hp + Hp:g * 2 * Hp + Hp + H].set(
                w_ih_b[g * H:(g + 1) * H, :].T)
        return w.astype(jnp.bfloat16)

    def pack_hh_fused(w_hh_f, w_hh_b):
        # Block-diagonal (2*Hp, 8*Hp): h_f feeds forward gates, h_b backward.
        w = jnp.zeros((2 * Hp, G), jnp.float32)
        for g in range(4):
            w = w.at[:H, g * 2 * Hp:g * 2 * Hp + H].set(
                w_hh_f[g * H:(g + 1) * H, :].T)
            w = w.at[Hp:Hp + H, g * 2 * Hp + Hp:g * 2 * Hp + Hp + H].set(
                w_hh_b[g * H:(g + 1) * H, :].T)
        return w.astype(jnp.bfloat16)

    def pack_b_fused(b_f, b_b):
        b = jnp.zeros((1, G), jnp.float32)
        for g in range(4):
            b = b.at[0, g * 2 * Hp:g * 2 * Hp + H].set(b_f[g * H:(g + 1) * H])
            b = b.at[0, g * 2 * Hp + Hp:g * 2 * Hp + Hp + H].set(b_b[g * H:(g + 1) * H])
        return b

    p = {"H": H, "Hp": Hp, "V": output_size, "Vp": v_pad, "Dp": d_pad}

    ef, eb = raw_lstm_dir(input_size), raw_lstm_dir(input_size)
    p["enc_wih_f"] = pack_ih_dir(ef[0], input_size, d_pad)
    p["enc_wih_b"] = pack_ih_dir(eb[0], input_size, d_pad)
    p["enc_whh"] = pack_hh_fused(ef[1], eb[1])
    p["enc_b"] = pack_b_fused(ef[2], eb[2])

    df, db = raw_lstm_dir(output_size), raw_lstm_dir(output_size)
    p["dec_wih"] = pack_ih_fused(df[0], db[0], output_size, v_pad)
    p["dec_whh"] = pack_hh_fused(df[1], db[1])
    p["dec_b"] = pack_b_fused(df[2], db[2])

    # Output linear (V, 2H): split by direction onto the [h_f | h_b] rows.
    k_lin = float(1.0 / np.sqrt(2 * H))
    w_out = uni((output_size, 2 * H), k_lin)
    b_out = uni((output_size,), k_lin)
    wo = jnp.zeros((2 * Hp, v_pad), jnp.float32)
    wo = wo.at[:H, :output_size].set(w_out[:, :H].T)
    wo = wo.at[Hp:Hp + H, :output_size].set(w_out[:, H:].T)
    p["out_w"] = wo.astype(jnp.bfloat16)
    # Padded vocab lanes: -1e30 bias -> never argmax winners, zero softmax mass.
    p["out_b"] = jnp.full((1, v_pad), -1e30, jnp.float32).at[0, :output_size].set(b_out)
    return p


# -----------------------------------------------------------------------------
# Model forward (mirrors EncoderRNN / DecoderRNN / EncoderDecoder)
# -----------------------------------------------------------------------------
def encoder_decoder_forward(signal, params, output_dict, max_length,
                            target_onehot=None, max_loop=None):
    if target_onehot is not None:
        # TODO(synk): the teacher-forcing path feeds a 2-D tensor into a batched
        # bidirectional LSTM in the PyTorch reference and would raise there too.
        raise NotImplementedError("target_onehot (teacher forcing) path not supported")

    signal = jnp.asarray(signal, jnp.float32)
    B, T, D = signal.shape
    Hp, V = params["Hp"], params["V"]
    Dp, Vp = params["Dp"], params["Vp"]
    Bp = _round_up(B, 8)
    if max_loop is None:
        max_loop = max_length
    max_loop = int(max_loop)

    # Pad batch (sublanes) / features (lanes); time-major layout.
    sig = jnp.zeros((T, Bp, Dp), jnp.float32)
    sig = sig.at[:, :B, :D].set(jnp.transpose(signal, (1, 0, 2)))

    # --- Hoisted encoder input projection: one big matmul per direction,   ---
    # --- outside the serial recurrence (review #1); signal read only once. ---
    x_fwd = sig.reshape(T * Bp, Dp).astype(jnp.bfloat16)
    x_bwd = sig[::-1].reshape(T * Bp, Dp).astype(jnp.bfloat16)
    gin_f = jnp.dot(x_fwd, params["enc_wih_f"], preferred_element_type=jnp.float32)
    gin_b = jnp.dot(x_bwd, params["enc_wih_b"], preferred_element_type=jnp.float32)
    gates_in = jnp.concatenate(
        [gin_f.reshape(T, Bp, 4, Hp), gin_b.reshape(T, Bp, 4, Hp)], axis=3,
    ).reshape(T, Bp, 8 * Hp)

    h_enc, c_enc = _encode(params, gates_in)

    sos = jnp.zeros((Bp, Vp), jnp.float32).at[:, output_dict["SOS"]].set(1.0)
    out_all, nsteps = _decode(params, h_enc, c_enc, sos,
                              n_real_batch=B, eos_idx=output_dict["EOS"],
                              max_loop=max_loop)

    # Single host sync for the data-dependent early-EOS output length.
    n = int(jax.device_get(nsteps)[0])
    n = max(1, min(n, max_loop))
    # (max_loop, Bp, Vp) -> (B, n, V): trim unwritten steps / padding, batch-major.
    return jnp.transpose(out_all[:n, :B, :V], (1, 0, 2))


# -----------------------------------------------------------------------------
# Demo
# -----------------------------------------------------------------------------
if __name__ == "__main__":
    key = jax.random.PRNGKey(0)

    B, T, input_size, hidden_size = 2, 8, 16, 32
    output_dict = {"SOS": 0, "EOS": 1, "A": 2, "B": 3, "C": 4, "D": 5}
    max_length = 5
    V = len(output_dict)

    params = init_params(key, input_size, hidden_size, V,
                         d_pad=_round_up(input_size, 128),
                         v_pad=_round_up(V, 128),
                         h_pad=_round_up(hidden_size, 64))
    signal = jax.random.normal(jax.random.fold_in(key, 123),
                               (B, T, input_size), jnp.float32)

    out = encoder_decoder_forward(signal, params, output_dict, max_length)
    out = jax.block_until_ready(out)

    assert out.ndim == 3 and out.shape[0] == B and out.shape[2] == V
    assert 1 <= out.shape[1] <= max_length
    assert bool(jnp.all(jnp.isfinite(out)))
    print("KERNEL_OK")
</pallas_src>

<mosaic_0001>
module attributes {stable_mosaic.version = 11 : i64} {
  func.func @_encoder_kernel(%arg0: i32, %arg1: memref<8x8x512xf32, #tpu.memory_space<vmem>>, %arg2: memref<128x512xbf16, #tpu.memory_space<vmem>>, %arg3: memref<1x512xf32, #tpu.memory_space<vmem>>, %arg4: memref<8x128xf32, #tpu.memory_space<vmem>>, %arg5: memref<8x128xf32, #tpu.memory_space<vmem>>) attributes {dimension_semantics = [#tpu.dimension_semantics<arbitrary>], iteration_bounds = array<i64: 1>, scalar_prefetch = 0 : i64, scratch_operands = 0 : i64, tpu.core_type = #tpu.core_type<tc>, window_params = [{transform_indices = @transform_0, window_bounds = array<i64: 8, 8, 512>}, {pipeline_mode = #tpu.pipeline_mode<synchronous>, transform_indices = @transform_1, window_bounds = array<i64: 128, 512>}, {pipeline_mode = #tpu.pipeline_mode<synchronous>, transform_indices = @transform_2, window_bounds = array<i64: 1, 512>}, {pipeline_mode = #tpu.pipeline_mode<synchronous>, transform_indices = @transform_3, window_bounds = array<i64: 8, 128>}, {pipeline_mode = #tpu.pipeline_mode<synchronous>, transform_indices = @transform_4, window_bounds = array<i64: 8, 128>}]} {
    %c0_i32 = arith.constant 0 : i32
    %0 = arith.cmpi eq, %arg0, %c0_i32 : i32
    %1 = arith.extui %0 : i1 to i32
    %c0_i32_0 = arith.constant 0 : i32
    %2 = arith.cmpi ne, %1, %c0_i32_0 : i32
    scf.if %2 {
      %cst_60 = arith.constant 0.000000e+00 : f32
      %273 = vector.broadcast %cst_60 : f32 to vector<8x128xf32>
      %c0_61 = arith.constant 0 : index
      %c0_62 = arith.constant 0 : index
      %274 = vector.load %arg4[%c0_61, %c0_62] : memref<8x128xf32, #tpu.memory_space<vmem>>, vector<8x128xf32>
      tpu.vector_store %arg4[%c0_61, %c0_62], %273 {strides = array<i32>} : memref<8x128xf32, #tpu.memory_space<vmem>>, vector<8x128xf32>,
      %cst_63 = arith.constant 0.000000e+00 : f32
      %275 = vector.broadcast %cst_63 : f32 to vector<8x128xf32>
      %c0_64 = arith.constant 0 : index
      %c0_65 = arith.constant 0 : index
      %276 = vector.load %arg5[%c0_64, %c0_65] : memref<8x128xf32, #tpu.memory_space<vmem>>, vector<8x128xf32>
      tpu.vector_store %arg5[%c0_64, %c0_65], %275 {strides = array<i32>} : memref<8x128xf32, #tpu.memory_space<vmem>>, vector<8x128xf32>,
    } else {
    }
    %c0 = arith.constant 0 : index
    %c0_1 = arith.constant 0 : index
    %3 = vector.load %arg2[%c0, %c0_1] : memref<128x512xbf16, #tpu.memory_space<vmem>>, vector<128x512xbf16>
    %c0_2 = arith.constant 0 : index
    %c0_3 = arith.constant 0 : index
    %4 = vector.load %arg3[%c0_2, %c0_3] : memref<1x512xf32, #tpu.memory_space<vmem>>, vector<1x512xf32>
    %c0_4 = arith.constant 0 : index
    %c0_5 = arith.constant 0 : index
    %5 = vector.load %arg4[%c0_4, %c0_5] : memref<8x128xf32, #tpu.memory_space<vmem>>, vector<8x128xf32>
    %c0_6 = arith.constant 0 : index
    %c0_7 = arith.constant 0 : index
    %6 = vector.load %arg5[%c0_6, %c0_7] : memref<8x128xf32, #tpu.memory_space<vmem>>, vector<8x128xf32>
    %c0_i32_8 = arith.constant 0 : i32
    %7 = arith.index_cast %c0_i32_8 : i32 to index
    %c0_9 = arith.constant 0 : index
    %c0_10 = arith.constant 0 : index
    %8 = vector.load %arg1[%7, %c0_9, %c0_10] : memref<8x8x512xf32, #tpu.memory_space<vmem>>, vector<1x8x512xf32>
    %9 = vector.shape_cast %8 : vector<1x8x512xf32> to vector<8x512xf32>
    %10 = arith.truncf %5 : vector<8x128xf32> to vector<8x128xbf16>
    %cst = arith.constant dense<0.000000e+00> : vector<8x512xf32>
    %11 = tpu.matmul %10, %3, %cst {dimension_numbers = #tpu.dot_dimension_numbers<[1], [0], [0], [1], [0, 0, 1, 1], [], []>} : vector<8x128xbf16>, vector<128x512xbf16>, vector<8x512xf32> -> vector<8x512xf32>
    %12 = arith.addf %9, %11 : vector<8x512xf32>
    %13 = vector.broadcast %4 : vector<1x512xf32> to vector<8x512xf32>
    %14 = arith.addf %12, %13 : vector<8x512xf32>
    %15 = vector.extract_strided_slice %14 {offsets = [0, 0], sizes = [8, 128], strides = [1, 1]} : vector<8x512xf32> to vector<8x128xf32>
    %16 = arith.negf %15 : vector<8x128xf32>
    %17 = math.exp %16 : vector<8x128xf32>
    %cst_11 = arith.constant 1.000000e+00 : f32
    %18 = vector.broadcast %cst_11 : f32 to vector<8x128xf32>
    %19 = arith.addf %18, %17 : vector<8x128xf32>
    %20 = arith.divf %18, %19 : vector<8x128xf32>
    %21 = vector.extract_strided_slice %14 {offsets = [0, 128], sizes = [8, 128], strides = [1, 1]} : vector<8x512xf32> to vector<8x128xf32>
    %22 = arith.negf %21 : vector<8x128xf32>
    %23 = math.exp %22 : vector<8x128xf32>
    %cst_12 = arith.constant 1.000000e+00 : f32
    %24 = vector.broadcast %cst_12 : f32 to vector<8x128xf32>
    %25 = arith.addf %24, %23 : vector<8x128xf32>
    %26 = arith.divf %24, %25 : vector<8x128xf32>
    %27 = vector.extract_strided_slice %14 {offsets = [0, 256], sizes = [8, 128], strides = [1, 1]} : vector<8x512xf32> to vector<8x128xf32>
    %28 = math.tanh %27 : vector<8x128xf32>
    %29 = vector.extract_strided_slice %14 {offsets = [0, 384], sizes = [8, 128], strides = [1, 1]} : vector<8x512xf32> to vector<8x128xf32>
    %30 = arith.negf %29 : vector<8x128xf32>
    %31 = math.exp %30 : vector<8x128xf32>
    %cst_13 = arith.constant 1.000000e+00 : f32
    %32 = vector.broadcast %cst_13 : f32 to vector<8x128xf32>
    %33 = arith.addf %32, %31 : vector<8x128xf32>
    %34 = arith.divf %32, %33 : vector<8x128xf32>
    %35 = arith.mulf %26, %6 : vector<8x128xf32>
    %36 = arith.mulf %20, %28 : vector<8x128xf32>
    %37 = arith.addf %35, %36 : vector<8x128xf32>
    %38 = math.tanh %37 : vector<8x128xf32>
    %39 = arith.mulf %34, %38 : vector<8x128xf32>
    %c1_i32 = arith.constant 1 : i32
    %40 = arith.index_cast %c1_i32 : i32 to index
    %c0_14 = arith.constant 0 : index
    %c0_15 = arith.constant 0 : index
    %41 = vector.load %arg1[%40, %c0_14, %c0_15] : memref<8x8x512xf32, #tpu.memory_space<vmem>>, vector<1x8x512xf32>
    %42 = vector.shape_cast %41 : vector<1x8x512xf32> to vector<8x512xf32>
    %43 = arith.truncf %39 : vector<8x128xf32> to vector<8x128xbf16>
    %cst_16 = arith.constant dense<0.000000e+00> : vector<8x512xf32>
    %44 = tpu.matmul %43, %3, %cst_16 {dimension_numbers = #tpu.dot_dimension_numbers<[1], [0], [0], [1], [0, 0, 1, 1], [], []>} : vector<8x128xbf16>, vector<128x512xbf16>, vector<8x512xf32> -> vector<8x512xf32>
    %45 = arith.addf %42, %44 : vector<8x512xf32>
    %46 = vector.broadcast %4 : vector<1x512xf32> to vector<8x512xf32>
    %47 = arith.addf %45, %46 : vector<8x512xf32>
    %48 = vector.extract_strided_slice %47 {offsets = [0, 0], sizes = [8, 128], strides = [1, 1]} : vector<8x512xf32> to vector<8x128xf32>
    %49 = arith.negf %48 : vector<8x128xf32>
    %50 = math.exp %49 : vector<8x128xf32>
    %cst_17 = arith.constant 1.000000e+00 : f32
    %51 = vector.broadcast %cst_17 : f32 to vector<8x128xf32>
    %52 = arith.addf %51, %50 : vector<8x128xf32>
    %53 = arith.divf %51, %52 : vector<8x128xf32>
    %54 = vector.extract_strided_slice %47 {offsets = [0, 128], sizes = [8, 128], strides = [1, 1]} : vector<8x512xf32> to vector<8x128xf32>
    %55 = arith.negf %54 : vector<8x128xf32>
    %56 = math.exp %55 : vector<8x128xf32>
    %cst_18 = arith.constant 1.000000e+00 : f32
    %57 = vector.broadcast %cst_18 : f32 to vector<8x128xf32>
    %58 = arith.addf %57, %56 : vector<8x128xf32>
    %59 = arith.divf %57, %58 : vector<8x128xf32>
    %60 = vector.extract_strided_slice %47 {offsets = [0, 256], sizes = [8, 128], strides = [1, 1]} : vector<8x512xf32> to vector<8x128xf32>
    %61 = math.tanh %60 : vector<8x128xf32>
    %62 = vector.extract_strided_slice %47 {offsets = [0, 384], sizes = [8, 128], strides = [1, 1]} : vector<8x512xf32> to vector<8x128xf32>
    %63 = arith.negf %62 : vector<8x128xf32>
    %64 = math.exp %63 : vector<8x128xf32>
    %cst_19 = arith.constant 1.000000e+00 : f32
    %65 = vector.broadcast %cst_19 : f32 to vector<8x128xf32>
    %66 = arith.addf %65, %64 : vector<8x128xf32>
    %67 = arith.divf %65, %66 : vector<8x128xf32>
    %68 = arith.mulf %59, %37 : vector<8x128xf32>
    %69 = arith.mulf %53, %61 : vector<8x128xf32>
    %70 = arith.addf %68, %69 : vector<8x128xf32>
    %71 = math.tanh %70 : vector<8x128xf32>
    %72 = arith.mulf %67, %71 : vector<8x128xf32>
    %c2_i32 = arith.constant 2 : i32
    %73 = arith.index_cast %c2_i32 : i32 to index
    %c0_20 = arith.constant 0 : index
    %c0_21 = arith.constant 0 : index
    %74 = vector.load %arg1[%73, %c0_20, %c0_21] : memref<8x8x512xf32, #tpu.memory_space<vmem>>, vector<1x8x512xf32>
    %75 = vector.shape_cast %74 : vector<1x8x512xf32> to vector<8x512xf32>
    %76 = arith.truncf %72 : vector<8x128xf32> to vector<8x128xbf16>
    %cst_22 = arith.constant dense<0.000000e+00> : vector<8x512xf32>
    %77 = tpu.matmul %76, %3, %cst_22 {dimension_numbers = #tpu.dot_dimension_numbers<[1], [0], [0], [1], [0, 0, 1, 1], [], []>} : vector<8x128xbf16>, vector<128x512xbf16>, vector<8x512xf32> -> vector<8x512xf32>
    %78 = arith.addf %75, %77 : vector<8x512xf32>
    %79 = vector.broadcast %4 : vector<1x512xf32> to vector<8x512xf32>
    %80 = arith.addf %78, %79 : vector<8x512xf32>
    %81 = vector.extract_strided_slice %80 {offsets = [0, 0], sizes = [8, 128], strides = [1, 1]} : vector<8x512xf32> to vector<8x128xf32>
    %82 = arith.negf %81 : vector<8x128xf32>
    %83 = math.exp %82 : vector<8x128xf32>
    %cst_23 = arith.constant 1.000000e+00 : f32
    %84 = vector.broadcast %cst_23 : f32 to vector<8x128xf32>
    %85 = arith.addf %84, %83 : vector<8x128xf32>
    %86 = arith.divf %84, %85 : vector<8x128xf32>
    %87 = vector.extract_strided_slice %80 {offsets = [0, 128], sizes = [8, 128], strides = [1, 1]} : vector<8x512xf32> to vector<8x128xf32>
    %88 = arith.negf %87 : vector<8x128xf32>
    %89 = math.exp %88 : vector<8x128xf32>
    %cst_24 = arith.constant 1.000000e+00 : f32
    %90 = vector.broadcast %cst_24 : f32 to vector<8x128xf32>
    %91 = arith.addf %90, %89 : vector<8x128xf32>
    %92 = arith.divf %90, %91 : vector<8x128xf32>
    %93 = vector.extract_strided_slice %80 {offsets = [0, 256], sizes = [8, 128], strides = [1, 1]} : vector<8x512xf32> to vector<8x128xf32>
    %94 = math.tanh %93 : vector<8x128xf32>
    %95 = vector.extract_strided_slice %80 {offsets = [0, 384], sizes = [8, 128], strides = [1, 1]} : vector<8x512xf32> to vector<8x128xf32>
    %96 = arith.negf %95 : vector<8x128xf32>
    %97 = math.exp %96 : vector<8x128xf32>
    %cst_25 = arith.constant 1.000000e+00 : f32
    %98 = vector.broadcast %cst_25 : f32 to vector<8x128xf32>
    %99 = arith.addf %98, %97 : vector<8x128xf32>
    %100 = arith.divf %98, %99 : vector<8x128xf32>
    %101 = arith.mulf %92, %70 : vector<8x128xf32>
    %102 = arith.mulf %86, %94 : vector<8x128xf32>
    %103 = arith.addf %101, %102 : vector<8x128xf32>
    %104 = math.tanh %103 : vector<8x128xf32>
    %105 = arith.mulf %100, %104 : vector<8x128xf32>
    %c3_i32 = arith.constant 3 : i32
    %106 = arith.index_cast %c3_i32 : i32 to index
    %c0_26 = arith.constant 0 : index
    %c0_27 = arith.constant 0 : index
    %107 = vector.load %arg1[%106, %c0_26, %c0_27] : memref<8x8x512xf32, #tpu.memory_space<vmem>>, vector<1x8x512xf32>
    %108 = vector.shape_cast %107 : vector<1x8x512xf32> to vector<8x512xf32>
    %109 = arith.truncf %105 : vector<8x128xf32> to vector<8x128xbf16>
    %cst_28 = arith.constant dense<0.000000e+00> : vector<8x512xf32>
    %110 = tpu.matmul %109, %3, %cst_28 {dimension_numbers = #tpu.dot_dimension_numbers<[1], [0], [0], [1], [0, 0, 1, 1], [], []>} : vector<8x128xbf16>, vector<128x512xbf16>, vector<8x512xf32> -> vector<8x512xf32>
    %111 = arith.addf %108, %110 : vector<8x512xf32>
    %112 = vector.broadcast %4 : vector<1x512xf32> to vector<8x512xf32>
    %113 = arith.addf %111, %112 : vector<8x512xf32>
    %114 = vector.extract_strided_slice %113 {offsets = [0, 0], sizes = [8, 128], strides = [1, 1]} : vector<8x512xf32> to vector<8x128xf32>
    %115 = arith.negf %114 : vector<8x128xf32>
    %116 = math.exp %115 : vector<8x128xf32>
    %cst_29 = arith.constant 1.000000e+00 : f32
    %117 = vector.broadcast %cst_29 : f32 to vector<8x128xf32>
    %118 = arith.addf %117, %116 : vector<8x128xf32>
    %119 = arith.divf %117, %118 : vector<8x128xf32>
    %120 = vector.extract_strided_slice %113 {offsets = [0, 128], sizes = [8, 128], strides = [1, 1]} : vector<8x512xf32> to vector<8x128xf32>
    %121 = arith.negf %120 : vector<8x128xf32>
    %122 = math.exp %121 : vector<8x128xf32>
    %cst_30 = arith.constant 1.000000e+00 : f32
    %123 = vector.broadcast %cst_30 : f32 to vector<8x128xf32>
    %124 = arith.addf %123, %122 : vector<8x128xf32>
    %125 = arith.divf %123, %124 : vector<8x128xf32>
    %126 = vector.extract_strided_slice %113 {offsets = [0, 256], sizes = [8, 128], strides = [1, 1]} : vector<8x512xf32> to vector<8x128xf32>
    %127 = math.tanh %126 : vector<8x128xf32>
    %128 = vector.extract_strided_slice %113 {offsets = [0, 384], sizes = [8, 128], strides = [1, 1]} : vector<8x512xf32> to vector<8x128xf32>
    %129 = arith.negf %128 : vector<8x128xf32>
    %130 = math.exp %129 : vector<8x128xf32>
    %cst_31 = arith.constant 1.000000e+00 : f32
    %131 = vector.broadcast %cst_31 : f32 to vector<8x128xf32>
    %132 = arith.addf %131, %130 : vector<8x128xf32>
    %133 = arith.divf %131, %132 : vector<8x128xf32>
    %134 = arith.mulf %125, %103 : vector<8x128xf32>
    %135 = arith.mulf %119, %127 : vector<8x128xf32>
    %136 = arith.addf %134, %135 : vector<8x128xf32>
    %137 = math.tanh %136 : vector<8x128xf32>
    %138 = arith.mulf %133, %137 : vector<8x128xf32>
    %c4_i32 = arith.constant 4 : i32
    %139 = arith.index_cast %c4_i32 : i32 to index
    %c0_32 = arith.constant 0 : index
    %c0_33 = arith.constant 0 : index
    %140 = vector.load %arg1[%139, %c0_32, %c0_33] : memref<8x8x512xf32, #tpu.memory_space<vmem>>, vector<1x8x512xf32>
    %141 = vector.shape_cast %140 : vector<1x8x512xf32> to vector<8x512xf32>
    %142 = arith.truncf %138 : vector<8x128xf32> to vector<8x128xbf16>
    %cst_34 = arith.constant dense<0.000000e+00> : vector<8x512xf32>
    %143 = tpu.matmul %142, %3, %cst_34 {dimension_numbers = #tpu.dot_dimension_numbers<[1], [0], [0], [1], [0, 0, 1, 1], [], []>} : vector<8x128xbf16>, vector<128x512xbf16>, vector<8x512xf32> -> vector<8x512xf32>
    %144 = arith.addf %141, %143 : vector<8x512xf32>
    %145 = vector.broadcast %4 : vector<1x512xf32> to vector<8x512xf32>
    %146 = arith.addf %144, %145 : vector<8x512xf32>
    %147 = vector.extract_strided_slice %146 {offsets = [0, 0], sizes = [8, 128], strides = [1, 1]} : vector<8x512xf32> to vector<8x128xf32>
    %148 = arith.negf %147 : vector<8x128xf32>
    %149 = math.exp %148 : vector<8x128xf32>
    %cst_35 = arith.constant 1.000000e+00 : f32
    %150 = vector.broadcast %cst_35 : f32 to vector<8x128xf32>
    %151 = arith.addf %150, %149 : vector<8x128xf32>
    %152 = arith.divf %150, %151 : vector<8x128xf32>
    %153 = vector.extract_strided_slice %146 {offsets = [0, 128], sizes = [8, 128], strides = [1, 1]} : vector<8x512xf32> to vector<8x128xf32>
    %154 = arith.negf %153 : vector<8x128xf32>
    %155 = math.exp %154 : vector<8x128xf32>
    %cst_36 = arith.constant 1.000000e+00 : f32
    %156 = vector.broadcast %cst_36 : f32 to vector<8x128xf32>
    %157 = arith.addf %156, %155 : vector<8x128xf32>
    %158 = arith.divf %156, %157 : vector<8x128xf32>
    %159 = vector.extract_strided_slice %146 {offsets = [0, 256], sizes = [8, 128], strides = [1, 1]} : vector<8x512xf32> to vector<8x128xf32>
    %160 = math.tanh %159 : vector<8x128xf32>
    %161 = vector.extract_strided_slice %146 {offsets = [0, 384], sizes = [8, 128], strides = [1, 1]} : vector<8x512xf32> to vector<8x128xf32>
    %162 = arith.negf %161 : vector<8x128xf32>
    %163 = math.exp %162 : vector<8x128xf32>
    %cst_37 = arith.constant 1.000000e+00 : f32
    %164 = vector.broadcast %cst_37 : f32 to vector<8x128xf32>
    %165 = arith.addf %164, %163 : vector<8x128xf32>
    %166 = arith.divf %164, %165 : vector<8x128xf32>
    %167 = arith.mulf %158, %136 : vector<8x128xf32>
    %168 = arith.mulf %152, %160 : vector<8x128xf32>
    %169 = arith.addf %167, %168 : vector<8x128xf32>
    %170 = math.tanh %169 : vector<8x128xf32>
    %171 = arith.mulf %166, %170 : vector<8x128xf32>
    %c5_i32 = arith.constant 5 : i32
    %172 = arith.index_cast %c5_i32 : i32 to index
    %c0_38 = arith.constant 0 : index
    %c0_39 = arith.constant 0 : index
    %173 = vector.load %arg1[%172, %c0_38, %c0_39] : memref<8x8x512xf32, #tpu.memory_space<vmem>>, vector<1x8x512xf32>
    %174 = vector.shape_cast %173 : vector<1x8x512xf32> to vector<8x512xf32>
    %175 = arith.truncf %171 : vector<8x128xf32> to vector<8x128xbf16>
    %cst_40 = arith.constant dense<0.000000e+00> : vector<8x512xf32>
    %176 = tpu.matmul %175, %3, %cst_40 {dimension_numbers = #tpu.dot_dimension_numbers<[1], [0], [0], [1], [0, 0, 1, 1], [], []>} : vector<8x128xbf16>, vector<128x512xbf16>, vector<8x512xf32> -> vector<8x512xf32>
    %177 = arith.addf %174, %176 : vector<8x512xf32>
    %178 = vector.broadcast %4 : vector<1x512xf32> to vector<8x512xf32>
    %179 = arith.addf %177, %178 : vector<8x512xf32>
    %180 = vector.extract_strided_slice %179 {offsets = [0, 0], sizes = [8, 128], strides = [1, 1]} : vector<8x512xf32> to vector<8x128xf32>
    %181 = arith.negf %180 : vector<8x128xf32>
    %182 = math.exp %181 : vector<8x128xf32>
    %cst_41 = arith.constant 1.000000e+00 : f32
    %183 = vector.broadcast %cst_41 : f32 to vector<8x128xf32>
    %184 = arith.addf %183, %182 : vector<8x128xf32>
    %185 = arith.divf %183, %184 : vector<8x128xf32>
    %186 = vector.extract_strided_slice %179 {offsets = [0, 128], sizes = [8, 128], strides = [1, 1]} : vector<8x512xf32> to vector<8x128xf32>
    %187 = arith.negf %186 : vector<8x128xf32>
    %188 = math.exp %187 : vector<8x128xf32>
    %cst_42 = arith.constant 1.000000e+00 : f32
    %189 = vector.broadcast %cst_42 : f32 to vector<8x128xf32>
    %190 = arith.addf %189, %188 : vector<8x128xf32>
    %191 = arith.divf %189, %190 : vector<8x128xf32>
    %192 = vector.extract_strided_slice %179 {offsets = [0, 256], sizes = [8, 128], strides = [1, 1]} : vector<8x512xf32> to vector<8x128xf32>
    %193 = math.tanh %192 : vector<8x128xf32>
    %194 = vector.extract_strided_slice %179 {offsets = [0, 384], sizes = [8, 128], strides = [1, 1]} : vector<8x512xf32> to vector<8x128xf32>
    %195 = arith.negf %194 : vector<8x128xf32>
    %196 = math.exp %195 : vector<8x128xf32>
    %cst_43 = arith.constant 1.000000e+00 : f32
    %197 = vector.broadcast %cst_43 : f32 to vector<8x128xf32>
    %198 = arith.addf %197, %196 : vector<8x128xf32>
    %199 = arith.divf %197, %198 : vector<8x128xf32>
    %200 = arith.mulf %191, %169 : vector<8x128xf32>
    %201 = arith.mulf %185, %193 : vector<8x128xf32>
    %202 = arith.addf %200, %201 : vector<8x128xf32>
    %203 = math.tanh %202 : vector<8x128xf32>
    %204 = arith.mulf %199, %203 : vector<8x128xf32>
    %c6_i32 = arith.constant 6 : i32
    %205 = arith.index_cast %c6_i32 : i32 to index
    %c0_44 = arith.constant 0 : index
    %c0_45 = arith.constant 0 : index
    %206 = vector.load %arg1[%205, %c0_44, %c0_45] : memref<8x8x512xf32, #tpu.memory_space<vmem>>, vector<1x8x512xf32>
    %207 = vector.shape_cast %206 : vector<1x8x512xf32> to vector<8x512xf32>
    %208 = arith.truncf %204 : vector<8x128xf32> to vector<8x128xbf16>
    %cst_46 = arith.constant dense<0.000000e+00> : vector<8x512xf32>
    %209 = tpu.matmul %208, %3, %cst_46 {dimension_numbers = #tpu.dot_dimension_numbers<[1], [0], [0], [1], [0, 0, 1, 1], [], []>} : vector<8x128xbf16>, vector<128x512xbf16>, vector<8x512xf32> -> vector<8x512xf32>
    %210 = arith.addf %207, %209 : vector<8x512xf32>
    %211 = vector.broadcast %4 : vector<1x512xf32> to vector<8x512xf32>
    %212 = arith.addf %210, %211 : vector<8x512xf32>
    %213 = vector.extract_strided_slice %212 {offsets = [0, 0], sizes = [8, 128], strides = [1, 1]} : vector<8x512xf32> to vector<8x128xf32>
    %214 = arith.negf %213 : vector<8x128xf32>
    %215 = math.exp %214 : vector<8x128xf32>
    %cst_47 = arith.constant 1.000000e+00 : f32
    %216 = vector.broadcast %cst_47 : f32 to vector<8x128xf32>
    %217 = arith.addf %216, %215 : vector<8x128xf32>
    %218 = arith.divf %216, %217 : vector<8x128xf32>
    %219 = vector.extract_strided_slice %212 {offsets = [0, 128], sizes = [8, 128], strides = [1, 1]} : vector<8x512xf32> to vector<8x128xf32>
    %220 = arith.negf %219 : vector<8x128xf32>
    %221 = math.exp %220 : vector<8x128xf32>
    %cst_48 = arith.constant 1.000000e+00 : f32
    %222 = vector.broadcast %cst_48 : f32 to vector<8x128xf32>
    %223 = arith.addf %222, %221 : vector<8x128xf32>
    %224 = arith.divf %222, %223 : vector<8x128xf32>
    %225 = vector.extract_strided_slice %212 {offsets = [0, 256], sizes = [8, 128], strides = [1, 1]} : vector<8x512xf32> to vector<8x128xf32>
    %226 = math.tanh %225 : vector<8x128xf32>
    %227 = vector.extract_strided_slice %212 {offsets = [0, 384], sizes = [8, 128], strides = [1, 1]} : vector<8x512xf32> to vector<8x128xf32>
    %228 = arith.negf %227 : vector<8x128xf32>
    %229 = math.exp %228 : vector<8x128xf32>
    %cst_49 = arith.constant 1.000000e+00 : f32
    %230 = vector.broadcast %cst_49 : f32 to vector<8x128xf32>
    %231 = arith.addf %230, %229 : vector<8x128xf32>
    %232 = arith.divf %230, %231 : vector<8x128xf32>
    %233 = arith.mulf %224, %202 : vector<8x128xf32>
    %234 = arith.mulf %218, %226 : vector<8x128xf32>
    %235 = arith.addf %233, %234 : vector<8x128xf32>
    %236 = math.tanh %235 : vector<8x128xf32>
    %237 = arith.mulf %232, %236 : vector<8x128xf32>
    %c7_i32 = arith.constant 7 : i32
    %238 = arith.index_cast %c7_i32 : i32 to index
    %c0_50 = arith.constant 0 : index
    %c0_51 = arith.constant 0 : index
    %239 = vector.load %arg1[%238, %c0_50, %c0_51] : memref<8x8x512xf32, #tpu.memory_space<vmem>>, vector<1x8x512xf32>
    %240 = vector.shape_cast %239 : vector<1x8x512xf32> to vector<8x512xf32>
    %241 = arith.truncf %237 : vector<8x128xf32> to vector<8x128xbf16>
    %cst_52 = arith.constant dense<0.000000e+00> : vector<8x512xf32>
    %242 = tpu.matmul %241, %3, %cst_52 {dimension_numbers = #tpu.dot_dimension_numbers<[1], [0], [0], [1], [0, 0, 1, 1], [], []>} : vector<8x128xbf16>, vector<128x512xbf16>, vector<8x512xf32> -> vector<8x512xf32>
    %243 = arith.addf %240, %242 : vector<8x512xf32>
    %244 = vector.broadcast %4 : vector<1x512xf32> to vector<8x512xf32>
    %245 = arith.addf %243, %244 : vector<8x512xf32>
    %246 = vector.extract_strided_slice %245 {offsets = [0, 0], sizes = [8, 128], strides = [1, 1]} : vector<8x512xf32> to vector<8x128xf32>
    %247 = arith.negf %246 : vector<8x128xf32>
    %248 = math.exp %247 : vector<8x128xf32>
    %cst_53 = arith.constant 1.000000e+00 : f32
    %249 = vector.broadcast %cst_53 : f32 to vector<8x128xf32>
    %250 = arith.addf %249, %248 : vector<8x128xf32>
    %251 = arith.divf %249, %250 : vector<8x128xf32>
    %252 = vector.extract_strided_slice %245 {offsets = [0, 128], sizes = [8, 128], strides = [1, 1]} : vector<8x512xf32> to vector<8x128xf32>
    %253 = arith.negf %252 : vector<8x128xf32>
    %254 = math.exp %253 : vector<8x128xf32>
    %cst_54 = arith.constant 1.000000e+00 : f32
    %255 = vector.broadcast %cst_54 : f32 to vector<8x128xf32>
    %256 = arith.addf %255, %254 : vector<8x128xf32>
    %257 = arith.divf %255, %256 : vector<8x128xf32>
    %258 = vector.extract_strided_slice %245 {offsets = [0, 256], sizes = [8, 128], strides = [1, 1]} : vector<8x512xf32> to vector<8x128xf32>
    %259 = math.tanh %258 : vector<8x128xf32>
    %260 = vector.extract_strided_slice %245 {offsets = [0, 384], sizes = [8, 128], strides = [1, 1]} : vector<8x512xf32> to vector<8x128xf32>
    %261 = arith.negf %260 : vector<8x128xf32>
    %262 = math.exp %261 : vector<8x128xf32>
    %cst_55 = arith.constant 1.000000e+00 : f32
    %263 = vector.broadcast %cst_55 : f32 to vector<8x128xf32>
    %264 = arith.addf %263, %262 : vector<8x128xf32>
    %265 = arith.divf %263, %264 : vector<8x128xf32>
    %266 = arith.mulf %257, %235 : vector<8x128xf32>
    %267 = arith.mulf %251, %259 : vector<8x128xf32>
    %268 = arith.addf %266, %267 : vector<8x128xf32>
    %269 = math.tanh %268 : vector<8x128xf32>
    %270 = arith.mulf %265, %269 : vector<8x128xf32>
    %c8_i32 = arith.constant 8 : i32
    %c0_56 = arith.constant 0 : index
    %c0_57 = arith.constant 0 : index
    %271 = vector.load %arg4[%c0_56, %c0_57] : memref<8x128xf32, #tpu.memory_space<vmem>>, vector<8x128xf32>
    tpu.vector_store %arg4[%c0_56, %c0_57], %270 {strides = array<i32>} : memref<8x128xf32, #tpu.memory_space<vmem>>, vector<8x128xf32>,
    %c0_58 = arith.constant 0 : index
    %c0_59 = arith.constant 0 : index
    %272 = vector.load %arg5[%c0_58, %c0_59] : memref<8x128xf32, #tpu.memory_space<vmem>>, vector<8x128xf32>
    tpu.vector_store %arg5[%c0_58, %c0_59], %268 {strides = array<i32>} : memref<8x128xf32, #tpu.memory_space<vmem>>, vector<8x128xf32>,
    return
  }
  func.func @transform_0(%arg0: i32) -> (i32, i32, i32) {
    %c0_i32 = arith.constant 0 : i32
    %c0_i32_0 = arith.constant 0 : i32
    %c0_i32_1 = arith.constant 0 : i32
    return %arg0, %c0_i32, %c0_i32_0 : i32, i32, i32
  }
  func.func @transform_1(%arg0: i32) -> (i32, i32) {
    %c0_i32 = arith.constant 0 : i32
    %c0_i32_0 = arith.constant 0 : i32
    %c0_i32_1 = arith.constant 0 : i32
    return %c0_i32, %c0_i32_0 : i32, i32
  }
  func.func @transform_2(%arg0: i32) -> (i32, i32) {
    %c0_i32 = arith.constant 0 : i32
    %c0_i32_0 = arith.constant 0 : i32
    %c0_i32_1 = arith.constant 0 : i32
    return %c0_i32, %c0_i32_0 : i32, i32
  }
  func.func @transform_3(%arg0: i32) -> (i32, i32) {
    %c0_i32 = arith.constant 0 : i32
    %c0_i32_0 = arith.constant 0 : i32
    %c0_i32_1 = arith.constant 0 : i32
    return %c0_i32, %c0_i32_0 : i32, i32
  }
  func.func @transform_4(%arg0: i32) -> (i32, i32) {
    %c0_i32 = arith.constant 0 : i32
    %c0_i32_0 = arith.constant 0 : i32
    %c0_i32_1 = arith.constant 0 : i32
    return %c0_i32, %c0_i32_0 : i32, i32
  }
}

</mosaic_0001>

<bundles_post_ra>
// kernel: tpu_custom_call.1
= control target key start
LH: loop header
LB: loop body
LE: loop exit
PB: predicated region body
PF: predicated region fallthrough
CT: control target
= control target key end

     0   :  { %10 = vsyncpa [#allocation3], 0  ;;  %s2228_s0 = inlined_call_operand.hbm [shape: f32[8,8,512], index: 0, kind: input, shape index: {}]   ;;  %s2229_s1 = inlined_call_operand.hbm [shape: bf16[128,512], index: 1, kind: input, shape index: {}]   ;;  %s2230_s2 = inlined_call_operand.hbm [shape: f32[1,512], index: 2, kind: input, shape index: {}]   ;;  %s2231_s3 = inlined_call_operand.hbm [shape: f32[8,128], index: 3, kind: output, shape index: {0}]   ;;  %s2232_s4 = inlined_call_operand.hbm [shape: f32[8,128], index: 4, kind: output, shape index: {1}]  }
   0x1   :  { %11 = vsyncpa [#allocation6], 0 }
   0x2   :  { %12 = vsyncpa [#allocation4], 0  ;;  %s31_s17 = sshll.u32 %s2229_s1, 4  ;;  %s32_s17 = int_to_ptr.hbm [resolvable:$true] %s31_s17 }
   0x3   :  { %13 = vsyncpa [#allocation10], 0  ;;  %s1790_s18 = smov [#allocation5]   ;;  %s18_s22 = sshll.u32 %s2228_s0, 4  ;;  %s19_s22 = int_to_ptr.hbm [resolvable:$true] %s18_s22 }
   0x4   :  { %s33_s19 = sshll.u32 %s1790_s18, 4  ;;  %s1791_s23 = smov 256   ;;  %s34_s19 = int_to_ptr.vmem [resolvable:$true] %s33_s19 }
   0x5   :  { %s1792_s24 = smov 16   ;;  %s1793_s25 = smov [#allocation2]  }
   0x6   :  { %39 = dma.hbm_to_vmem [thread:$0]  %s32_s17, 4096, %s34_s19, [#allocation6], %s1791_s23, %s1791_s23, %s1792_s24  }
   0x7   :  { %s20_s26 = sshll.u32 %s1793_s25, 4  ;;  %s1794_s27 = smov 512   ;;  %s21_s26 = int_to_ptr.vmem [resolvable:$true] %s20_s26 }
   0x8   :  { %s1795_s28 = smov 32   ;;  %s45_s30 = sshll.u32 %s2230_s2, 4  ;;  %s46_s30 = int_to_ptr.hbm [resolvable:$true] %s45_s30 }
   0x9   :  { %26 = dma.hbm_to_vmem [thread:$0]  %s19_s22, 4096, %s21_s26, [#allocation3], %s1794_s27, %s1794_s27, %s1795_s28  }
   0xa   :  { %s1796_s5 = smov [#allocation7]  }
   0xb   :  { %s47_s6 = sshll.u32 %s1796_s5, 4  ;;  %s48_s6 = int_to_ptr.vmem [resolvable:$true] %s47_s6 }
   0xc   :  { %50 = dma.hbm_to_vmem [thread:$0]  %s46_s30, 64, %s48_s6, [#allocation6]  }
   0xd   :  { %1782 = dma.done.wait [#allocation3], 4096  }
   0xe   :  { %1783 = vsyncadd [#allocation3], 4294963200 }
   0xf   :  { %1784 = dma.done.wait [#allocation6], 4160  }
  0x10   :  { %1785 = vsyncadd [#allocation6], 4294963136  ;;  %v1454_v0 = vld [vmem:[#allocation5 + $0xe0] sm:$0xf]  ;;  %v1522_v1 = vld [vmem:[#allocation5 + $0xec] sm:$0xf0] }
  0x11   :  { %v1520_v2 = vld [vmem:[#allocation5 + $0xe4] sm:$0xf]  ;;  %v1834_v3 = vor.u32 %v1522_v1, %v1454_v0  ;;  %v1456_v4 = vld [vmem:[#allocation5 + $0xf0] sm:$0xf0]  ;;  %v1521_v5 = vld [vmem:[#allocation5 + $0xec] sm:$0xf] }
  0x12   :  { %v1464_v6 = vld [vmem:[#allocation5 + $0xf8] sm:$0xf0]  ;;  %v1836_v7 = vor.u32 %v1520_v2, %v1456_v4  ;;  %v1438_v9 = vld [vmem:[#allocation5 + $0xc0] sm:$0xf]  ;;  %v1518_v10 = vld [vmem:[#allocation5 + $0xcc] sm:$0xf0] }
  0x13   :  { %v1838_v8 = vor.u32 %v1521_v5, %v1464_v6  ;;  %v1516_v11 = vld [vmem:[#allocation5 + $0xc4] sm:$0xf]  ;;  %269 = vmatpush.bf16.msra.mxu0 %v1834_v3  ;;  %v1841_v12 = vor.u32 %v1518_v10, %v1438_v9  ;;  %v1440_v13 = vld [vmem:[#allocation5 + $0xd0] sm:$0xf0]  ;;  %v1517_v14 = vld [vmem:[#allocation5 + $0xcc] sm:$0xf] }
  0x14   :  { %v1448_v15 = vld [vmem:[#allocation5 + $0xd8] sm:$0xf0]  ;;  %282 = vmatpush.bf16.msra.mxu1 %v1836_v7  ;;  %v1845_v16 = vor.u32 %v1516_v11, %v1440_v13  ;;  %v1462_v18 = vld [vmem:[#allocation5 + $0xe8] sm:$0xf]  ;;  %v1523_v19 = vld [vmem:[#allocation5 + $0xf4] sm:$0xf0] }
  0x15   :  { %308 = vmatpush.bf16.msra.mxu3 %v1838_v8  ;;  %v1847_v17 = vor.u32 %v1517_v14, %v1448_v15  ;;  %v1422_v20 = vld [vmem:[#allocation5 + $0xa0] sm:$0xf]  ;;  %v1849_v21 = vor.u32 %v1523_v19, %v1462_v18  ;;  %v1514_v22 = vld [vmem:[#allocation5 + $0xac] sm:$0xf0]  ;;  %v1512_v23 = vld [vmem:[#allocation5 + $0xa4] sm:$0xf] }
  0x16   :  { %v1424_v24 = vld [vmem:[#allocation5 + $0xb0] sm:$0xf0]  ;;  %v1513_v25 = vld [vmem:[#allocation5 + $0xac] sm:$0xf]  ;;  %v1432_v26 = vld [vmem:[#allocation5 + $0xb8] sm:$0xf0]  ;;  %v1853_v28 = vor.u32 %v1514_v22, %v1422_v20 }
  0x17   :  { %v1446_v27 = vld [vmem:[#allocation5 + $0xc8] sm:$0xf]  ;;  %270 = vmatpush.bf16.msra.mxu0 %v1841_v12  ;;  %295 = vmatpush.bf16.msra.mxu2 %v1849_v21  ;;  %v1519_v29 = vld [vmem:[#allocation5 + $0xd4] sm:$0xf0]  ;;  %v1406_v30 = vld [vmem:[#allocation5 + $0x80] sm:$0xf]  ;;  %v1857_v32 = vor.u32 %v1512_v23, %v1424_v24  ;;  %v1859_v33 = vor.u32 %v1513_v25, %v1432_v26 }
  0x18   :  { %v1510_v31 = vld [vmem:[#allocation5 + $0x8c] sm:$0xf0]  ;;  %283 = vmatpush.bf16.msra.mxu1 %v1845_v16  ;;  %v1861_v34 = vor.u32 %v1519_v29, %v1446_v27  ;;  %v1508_v35 = vld [vmem:[#allocation5 + $0x84] sm:$0xf]  ;;  %v1408_v36 = vld [vmem:[#allocation5 + $0x90] sm:$0xf0] }
  0x19   :  { %309 = vmatpush.bf16.msra.mxu3 %v1847_v17  ;;  %v1509_v37 = vld [vmem:[#allocation5 + $0x8c] sm:$0xf]  ;;  %v1416_v38 = vld [vmem:[#allocation5 + $0x98] sm:$0xf0]  ;;  %v1430_v39 = vld [vmem:[#allocation5 + $0xa8] sm:$0xf]  ;;  %v1865_v41 = vor.u32 %v1510_v31, %v1406_v30  ;;  %v1871_v45 = vor.u32 %v1508_v35, %v1408_v36 }
  0x1a   :  { %v1515_v40 = vld [vmem:[#allocation5 + $0xb4] sm:$0xf0]  ;;  %v1390_v43 = vld [vmem:[#allocation5 + $0x60] sm:$0xf]  ;;  %v1506_v44 = vld [vmem:[#allocation5 + $0x6c] sm:$0xf0]  ;;  %v1873_v46 = vor.u32 %v1509_v37, %v1416_v38 }
  0x1b   :  { %271 = vmatpush.bf16.msra.mxu0 %v1853_v28  ;;  %296 = vmatpush.bf16.msra.mxu2 %v1861_v34  ;;  %v1867_v42 = vor.u32 %v1515_v40, %v1430_v39  ;;  %v1504_v47 = vld [vmem:[#allocation5 + $0x64] sm:$0xf]  ;;  %v1414_v48 = vld [vmem:[#allocation5 + $0x88] sm:$0xf]  ;;  %v1511_v49 = vld [vmem:[#allocation5 + $0x94] sm:$0xf0]  ;;  %v1877_v53 = vor.u32 %v1506_v44, %v1390_v43 }
  0x1c   :  { %284 = vmatpush.bf16.msra.mxu1 %v1857_v32  ;;  %v1392_v50 = vld [vmem:[#allocation5 + $0x70] sm:$0xf0]  ;;  %v1505_v51 = vld [vmem:[#allocation5 + $0x6c] sm:$0xf]  ;;  %v1400_v52 = vld [vmem:[#allocation5 + $0x78] sm:$0xf0]  ;;  %v1879_v54 = vor.u32 %v1511_v49, %v1414_v48 }
  0x1d   :  { %310 = vmatpush.bf16.msra.mxu3 %v1859_v33  ;;  %v1374_v55 = vld [vmem:[#allocation5 + $0x40] sm:$0xf]  ;;  %v1502_v56 = vld [vmem:[#allocation5 + $0x4c] sm:$0xf0]  ;;  %v1883_v57 = vor.u32 %v1504_v47, %v1392_v50  ;;  %v1885_v58 = vor.u32 %v1505_v51, %v1400_v52  ;;  %v1500_v59 = vld [vmem:[#allocation5 + $0x44] sm:$0xf] }
  0x1e   :  { %v1398_v60 = vld [vmem:[#allocation5 + $0x68] sm:$0xf]  ;;  %v1507_v61 = vld [vmem:[#allocation5 + $0x74] sm:$0xf0]  ;;  %v1376_v62 = vld [vmem:[#allocation5 + $0x50] sm:$0xf0]  ;;  %v1889_v1 = vor.u32 %v1502_v56, %v1374_v55 }
  0x1f   :  { %272 = vmatpush.bf16.msra.mxu0 %v1865_v41  ;;  %297 = vmatpush.bf16.msra.mxu2 %v1867_v42  ;;  %v1501_v63 = vld [vmem:[#allocation5 + $0x4c] sm:$0xf]  ;;  %v1384_v0 = vld [vmem:[#allocation5 + $0x58] sm:$0xf0]  ;;  %v1891_v2 = vor.u32 %v1507_v61, %v1398_v60  ;;  %v1358_v4 = vld [vmem:[#allocation5 + $0x20] sm:$0xf]  ;;  %v1895_v6 = vor.u32 %v1500_v59, %v1376_v62 }
  0x20   :  { %285 = vmatpush.bf16.msra.mxu1 %v1871_v45  ;;  %v1498_v5 = vld [vmem:[#allocation5 + $0x2c] sm:$0xf0]  ;;  %v1897_v9 = vor.u32 %v1501_v63, %v1384_v0  ;;  %v1496_v10 = vld [vmem:[#allocation5 + $0x24] sm:$0xf]  ;;  %v1382_v11 = vld [vmem:[#allocation5 + $0x48] sm:$0xf] }
  0x21   :  { %311 = vmatpush.bf16.msra.mxu3 %v1873_v46  ;;  %v1503_v13 = vld [vmem:[#allocation5 + $0x54] sm:$0xf0]  ;;  %v1360_v14 = vld [vmem:[#allocation5 + $0x30] sm:$0xf0]  ;;  %v1497_v15 = vld [vmem:[#allocation5 + $0x2c] sm:$0xf]  ;;  %v1901_v19 = vor.u32 %v1498_v5, %v1358_v4 }
  0x22   :  { %v1368_v18 = vld [vmem:[#allocation5 + $0x38] sm:$0xf0]  ;;  %v1903_v20 = vor.u32 %v1503_v13, %v1382_v11  ;;  %v1342_v22 = vld [vmem:[#allocation5] sm:$0xf]  ;;  %v1494_v23 = vld [vmem:[#allocation5 + $0xc] sm:$0xf0]  ;;  %v1907_v24 = vor.u32 %v1496_v10, %v1360_v14 }
  0x23   :  { %273 = vmatpush.bf16.msra.mxu0 %v1877_v53  ;;  %298 = vmatpush.bf16.msra.mxu2 %v1879_v54  ;;  %v1909_v25 = vor.u32 %v1497_v15, %v1368_v18  ;;  %v1492_v26 = vld [vmem:[#allocation5 + $0x4] sm:$0xf]  ;;  %v1366_v27 = vld [vmem:[#allocation5 + $0x28] sm:$0xf]  ;;  %v1499_v29 = vld [vmem:[#allocation5 + $0x34] sm:$0xf0]  ;;  %v1913_v36 = vor.u32 %v1494_v23, %v1342_v22 }
  0x24   :  { %286 = vmatpush.bf16.msra.mxu1 %v1883_v57  ;;  %v1344_v30 = vld [vmem:[#allocation5 + $0x10] sm:$0xf0]  ;;  %v1493_v31 = vld [vmem:[#allocation5 + $0xc] sm:$0xf]  ;;  %v1352_v35 = vld [vmem:[#allocation5 + $0x18] sm:$0xf0]  ;;  %v1915_v37 = vor.u32 %v1499_v29, %v1366_v27 }
  0x25   :  { %312 = vmatpush.bf16.msra.mxu3 %v1885_v58  ;;  %v1919_v38 = vor.u32 %v1492_v26, %v1344_v30  ;;  %v1921_v39 = vor.u32 %v1493_v31, %v1352_v35  ;;  %v1350_v40 = vld [vmem:[#allocation5 + $0x8] sm:$0xf]  ;;  %v1495_v43 = vld [vmem:[#allocation5 + $0x14] sm:$0xf0]  ;;  %v1797_v47 = vmov 0.0|0.0   ;;  %v104_v49 = vld [vmem:[#allocation2] sm:$0xff] }
  0x26   :  { %v1927_v44 = vor.u32 %v1495_v43, %v1350_v40  ;;  %v101_v48 = vld [vmem:[#allocation7] sm:$0xf]  ;;  %v105_v51 = vld [vmem:[#allocation2 + $0x8] sm:$0xff]  ;;  %v107_v0 = vld [vmem:[#allocation2 + $0x18] sm:$0xff]  ;;  %s1798_s0 = smov [#allocation9]   ;;  %s1324_s9 = sshll.u32 %s2232_s4, 4  ;;  %s1325_s9 = int_to_ptr.hbm [resolvable:$true] %s1324_s9 }
  0x27   :  { %274 = vmatpush.bf16.msra.mxu0 %v1889_v1  ;;  %299 = vmatpush.bf16.msra.mxu2 %v1891_v2  ;;  %v1994_v50 = vperm.slane %v101_v48, 0  ;;  %v1996_v55 = vperm.slane %v101_v48, 1  ;;  %v2000_v5 = vperm.slane %v101_v48, 3  ;;  %v106_v26 = vld [vmem:[#allocation2 + $0x10] sm:$0xff]  ;;  %v2003_v40 = vperm.slane %v101_v48, 2  ;;  %s1322_s2 = sshll.u32 %s1798_s0, 4  ;;  %s1323_s2 = int_to_ptr.vmem [resolvable:$true] %s1322_s2 }
  0x28   :  { %287 = vmatpush.bf16.msra.mxu1 %v1895_v6  ;;  %s1799_s10 = smov [#allocation8]   ;;  %s1313_s13 = sshll.u32 %s2231_s3, 4  ;;  %s1314_s13 = int_to_ptr.hbm [resolvable:$true] %s1313_s13 }
  0x29   :  { %313 = vmatpush.bf16.msra.mxu3 %v1897_v9  ;;  %s1311_s11 = sshll.u32 %s1799_s10, 4  ;;  %s1312_s11 = int_to_ptr.vmem [resolvable:$true] %s1311_s11 }
  0x2b   :  { %275 = vmatpush.bf16.msra.mxu0 %v1901_v19  ;;  %300 = vmatpush.bf16.msra.mxu2 %v1903_v20 }
  0x2c   :  { %288 = vmatpush.bf16.msra.mxu1 %v1907_v24 }
  0x2d   :  { %314 = vmatpush.bf16.msra.mxu3 %v1909_v25 }
  0x2f   :  { %276 = vmatpush.bf16.msra.mxu0 %v1913_v36  ;;  %301 = vmatpush.bf16.msra.mxu2 %v1915_v37 }
  0x30   :  { %289 = vmatpush.bf16.msra.mxu1 %v1919_v38 }
  0x31   :  { %315 = vmatpush.bf16.msra.mxu3 %v1921_v39 }
  0x32   :  { %277 = vmatmul.bf16.vlgmr.msra.gmra.mxu0 %v1797_v47 }
  0x33   :  { %407 = vmatpush.bf16.msrb.mxu0 %v1834_v3  ;;  %290 = vmatmul.bf16.vlgmr.msra.gmra.mxu1 %v1797_v47 }
  0x34   :  { %420 = vmatpush.bf16.msrb.mxu1 %v1836_v7  ;;  %316 = vmatmul.bf16.vlgmr.msra.gmra.mxu3 %v1797_v47 }
  0x35   :  { %446 = vmatpush.bf16.msrb.mxu3 %v1838_v8  ;;  %302 = vmatpush.bf16.msra.mxu2 %v1927_v44 }
  0x37   :  { %408 = vmatpush.bf16.msrb.mxu0 %v1841_v12 }
  0x38   :  { %421 = vmatpush.bf16.msrb.mxu1 %v1845_v16  ;;  %303 = vmatmul.bf16.vlgmr.msra.gmra.mxu2 %v1797_v47 }
  0x39   :  { %433 = vmatpush.bf16.msrb.mxu2 %v1849_v21  ;;  %447 = vmatpush.bf16.msrb.mxu3 %v1847_v17 }
  0x3b   :  { %409 = vmatpush.bf16.msrb.mxu0 %v1853_v28 }
  0x3c   :  { %422 = vmatpush.bf16.msrb.mxu1 %v1857_v32 }
  0x3d   :  { %434 = vmatpush.bf16.msrb.mxu2 %v1861_v34  ;;  %448 = vmatpush.bf16.msrb.mxu3 %v1859_v33 }
  0x3f   :  { %410 = vmatpush.bf16.msrb.mxu0 %v1865_v41 }
  0x40   :  { %423 = vmatpush.bf16.msrb.mxu1 %v1871_v45 }
  0x41   :  { %435 = vmatpush.bf16.msrb.mxu2 %v1867_v42  ;;  %449 = vmatpush.bf16.msrb.mxu3 %v1873_v46 }
  0x43   :  { %411 = vmatpush.bf16.msrb.mxu0 %v1877_v53 }
  0x44   :  { %424 = vmatpush.bf16.msrb.mxu1 %v1883_v57 }
  0x45   :  { %436 = vmatpush.bf16.msrb.mxu2 %v1879_v54  ;;  %450 = vmatpush.bf16.msrb.mxu3 %v1885_v58 }
  0x47   :  { %412 = vmatpush.bf16.msrb.mxu0 %v1889_v1 }
  0x48   :  { %425 = vmatpush.bf16.msrb.mxu1 %v1895_v6 }
  0x49   :  { %437 = vmatpush.bf16.msrb.mxu2 %v1891_v2  ;;  %451 = vmatpush.bf16.msrb.mxu3 %v1897_v9 }
  0x4b   :  { %413 = vmatpush.bf16.msrb.mxu0 %v1901_v19 }
  0x4c   :  { %426 = vmatpush.bf16.msrb.mxu1 %v1907_v24 }
  0x4d   :  { %438 = vmatpush.bf16.msrb.mxu2 %v1903_v20  ;;  %452 = vmatpush.bf16.msrb.mxu3 %v1909_v25 }
  0x4f   :  { %414 = vmatpush.bf16.msrb.mxu0 %v1913_v36 }
  0x50   :  { %427 = vmatpush.bf16.msrb.mxu1 %v1919_v38 }
  0x51   :  { %439 = vmatpush.bf16.msrb.mxu2 %v1915_v37  ;;  %453 = vmatpush.bf16.msrb.mxu3 %v1921_v39 }
  0x53   :  { %536 = vmatpush.bf16.msra.mxu0 %v1834_v3 }
  0x54   :  { %549 = vmatpush.bf16.msra.mxu1 %v1836_v7 }
  0x55   :  { %575 = vmatpush.bf16.msra.mxu3 %v1838_v8  ;;  %440 = vmatpush.bf16.msrb.mxu2 %v1927_v44 }
  0x57   :  { %537 = vmatpush.bf16.msra.mxu0 %v1841_v12 }
  0x58   :  { %550 = vmatpush.bf16.msra.mxu1 %v1845_v16 }
  0x59   :  { %562 = vmatpush.bf16.msra.mxu2 %v1849_v21  ;;  %576 = vmatpush.bf16.msra.mxu3 %v1847_v17 }
  0x5b   :  { %538 = vmatpush.bf16.msra.mxu0 %v1853_v28 }
  0x5c   :  { %551 = vmatpush.bf16.msra.mxu1 %v1857_v32 }
  0x5d   :  { %563 = vmatpush.bf16.msra.mxu2 %v1861_v34  ;;  %577 = vmatpush.bf16.msra.mxu3 %v1859_v33 }
  0x5f   :  { %539 = vmatpush.bf16.msra.mxu0 %v1865_v41 }
  0x60   :  { %552 = vmatpush.bf16.msra.mxu1 %v1871_v45 }
  0x61   :  { %564 = vmatpush.bf16.msra.mxu2 %v1867_v42  ;;  %578 = vmatpush.bf16.msra.mxu3 %v1873_v46 }
  0x63   :  { %540 = vmatpush.bf16.msra.mxu0 %v1877_v53 }
  0x64   :  { %553 = vmatpush.bf16.msra.mxu1 %v1883_v57 }
  0x65   :  { %565 = vmatpush.bf16.msra.mxu2 %v1879_v54  ;;  %579 = vmatpush.bf16.msra.mxu3 %v1885_v58 }
  0x67   :  { %541 = vmatpush.bf16.msra.mxu0 %v1889_v1 }
  0x68   :  { %554 = vmatpush.bf16.msra.mxu1 %v1895_v6 }
  0x69   :  { %566 = vmatpush.bf16.msra.mxu2 %v1891_v2  ;;  %580 = vmatpush.bf16.msra.mxu3 %v1897_v9 }
  0x6b   :  { %542 = vmatpush.bf16.msra.mxu0 %v1901_v19 }
  0x6c   :  { %555 = vmatpush.bf16.msra.mxu1 %v1907_v24 }
  0x6d   :  { %567 = vmatpush.bf16.msra.mxu2 %v1903_v20  ;;  %581 = vmatpush.bf16.msra.mxu3 %v1909_v25 }
  0x6f   :  { %543 = vmatpush.bf16.msra.mxu0 %v1913_v36 }
  0x70   :  { %556 = vmatpush.bf16.msra.mxu1 %v1919_v38 }
  0x71   :  { %568 = vmatpush.bf16.msra.mxu2 %v1915_v37  ;;  %582 = vmatpush.bf16.msra.mxu3 %v1921_v39 }
  0x75   :  { %569 = vmatpush.bf16.msra.mxu2 %v1927_v44 }
  0xaf   :  { %v278_v52 = vpop.f32.mrf.mxu0 }
  0xb0   :  { %v321_v56 = vadd.f32 %v278_v52, %v104_v49  ;;  %v291_v59 = vpop.f32.mrf.mxu1 }
  0xb1   :  { %v322_v60 = vadd.f32 %v291_v59, %v105_v51 }
  0xb2   :  { %v334_v61 = vadd.f32 %v1994_v50, %v321_v56 }
  0xb3   :  { %v335_v62 = vadd.f32 %v1996_v55, %v322_v60 }
  0xb4   :  { %v1468_v63 = vmul.f32 -1.442695, %v334_v61 }
  0xb5   :  { %v1469_v4 = vmul.f32 -1.442695, %v335_v62 }
  0xb6   :  { %1534 = vpow2.f32 %v1468_v63 }
  0xb7   :  { %v317_v10 = vpop.f32.mrf.mxu3  ;;  %1536 = vpow2.f32 %v1469_v4  ;;  %v280_v13 = vpop.f32.mrf.mxu0 }
  0xb8   :  { %v324_v11 = vadd.f32 %v317_v10, %v107_v0  ;;  %v293_v14 = vpop.f32.mrf.mxu1 }
  0xba   :  { %v337_v15 = vadd.f32 %v2000_v5, %v324_v11 }
  0xbb   :  { %v304_v18 = vpop.f32.mrf.mxu2 }
  0xbc   :  { %v1470_v22 = vmul.f32 -1.442695, %v337_v15  ;;  %v1535_v23 = vpop.eup %1534  ;;  %v323_v35 = vadd.f32 %v304_v18, %v106_v26 }
  0xbd   :  { %v1537_v27 = vpop.eup %1536  ;;  %v341_v29 = vadd.f32 1.0, %v1535_v23 }
  0xbe   :  { %1538 = vpow2.f32 %v1470_v22  ;;  %v360_v30 = vadd.f32 1.0, %v1537_v27  ;;  %v336_v49 = vadd.f32 %v2003_v40, %v323_v35 }
  0xbf   :  { %v319_v31 = vpop.f32.mrf.mxu3  ;;  %1540 = vrcp.f32 %v341_v29  ;;  %v353_v63 = vand.u32 2147483648, %v341_v29  ;;  %v351_v48 = vand.u32 2147483647, %v341_v29  ;;  %vm347_vm2 = vweird.f32 %v341_v29 }
  0xc0   :  { %1542 = vrcp.f32 %v360_v30  ;;  %v372_v0 = vand.u32 2147483648, %v360_v30  ;;  %v370_v11 = vand.u32 2147483647, %v360_v30  ;;  %vm366_vm3 = vweird.f32 %v360_v30 }
  0xc1   :  { %v354_v22 = vor.u32 1.1754944e-38, %v353_v63  ;;  %vm352_vm6 = vcmp.eq.f32.partialorder %v351_v48, 8.507059e+37 }
  0xc2   :  { %v373_v26 = vor.u32 1.1754944e-38, %v372_v0  ;;  %vm371_vm7 = vcmp.eq.f32.partialorder %v370_v11, 8.507059e+37 }
  0xc3   :  { %v306_v43 = vpop.f32.mrf.mxu2 }
  0xc4   :  { %v1539_v47 = vpop.eup %1538 }
  0xc5   :  { %v380_v51 = vadd.f32 1.0, %v1539_v47  ;;  %v1541_v52 = vpop.eup %1540 }
  0xc6   :  { %v1543_v56 = vpop.eup %1542  ;;  %v343_v59 = vmul.f32 %v1541_v52, %v341_v29  ;;  %vm348_vm0 = vweird.f32 %v1541_v52 }
  0xc7   :  { %1544 = vrcp.f32 %v380_v51  ;;  %v362_v60 = vmul.f32 %v1543_v56, %v360_v30  ;;  %vm367_vm1 = vweird.f32 %v1543_v56  ;;  %vm349_vm4 = vmor %vm347_vm2, %vm348_vm0  ;;  %v392_v30 = vand.u32 2147483648, %v380_v51 }
  0xc8   :  { %1546 = vtanh.f32 %v336_v49  ;;  %v344_v61 = vsub.f32 1.0, %v343_v59  ;;  %vm368_vm5 = vmor %vm366_vm3, %vm367_vm1  ;;  %vm386_vm9 = vweird.f32 %v380_v51 }
  0xc9   :  { %v363_v62 = vsub.f32 1.0, %v362_v60  ;;  %v393_v63 = vor.u32 1.1754944e-38, %v392_v30 }
  0xca   :  { %v345_v4 = vmul.f32 %v1541_v52, %v344_v61 }
  0xcb   :  { %v364_v10 = vmul.f32 %v1543_v56, %v363_v62  ;;  %v390_v62 = vand.u32 2147483647, %v380_v51 }
  0xcc   :  { %v346_v14 = vadd.f32 %v1541_v52, %v345_v4 }
  0xcd   :  { %v1545_v13 = vpop.eup %1544  ;;  %v365_v23 = vadd.f32 %v1543_v56, %v364_v10  ;;  %vm391_vm11 = vcmp.eq.f32.partialorder %v390_v62, 8.507059e+37  ;;  %v403_v10 = vld [vmem:[#allocation2 + $0x28] sm:$0xff] }
  0xce   :  { %v1547_v15 = vpop.eup %1546  ;;  %v382_v18 = vmul.f32 %v1545_v13, %v380_v51  ;;  %v350_v27 = vsel %vm349_vm4, %v1541_v52, %v346_v14  ;;  %vm387_vm8 = vweird.f32 %v1545_v13  ;;  %v402_v51 = vld [vmem:[#allocation2 + $0x20] sm:$0xff] }
  0xcf   :  { %v355_v35 = vsel %vm352_vm6, %v354_v22, %v350_v27  ;;  %v369_v43 = vsel %vm368_vm5, %v1543_v56, %v365_v23  ;;  %vm388_vm10 = vmor %vm386_vm9, %vm387_vm8  ;;  %v405_v27 = vld [vmem:[#allocation2 + $0x38] sm:$0xff] }
  0xd0   :  { %v383_v31 = vsub.f32 1.0, %v382_v18  ;;  %v374_v47 = vsel %vm371_vm7, %v373_v26, %v369_v43  ;;  %v397_v49 = vmul.f32 %v1547_v15, %v355_v35 }
  0xd1   :  { %v396_v59 = vmul.f32 0.0, %v374_v47 }
  0xd2   :  { %v384_v60 = vmul.f32 %v1545_v13, %v383_v31 }
  0xd3   :  { %v2006_v61 = vadd.f32 %v397_v49, %v396_v59 }
  0xd4   :  { %v385_v29 = vadd.f32 %v1545_v13, %v384_v60 }
  0xd5   :  { %1548 = vtanh.f32 %v2006_v61 }
  0xd6   :  { %v389_v52 = vsel %vm388_vm10, %v1545_v13, %v385_v29 }
  0xd7   :  { %v394_v56 = vsel %vm391_vm11, %v393_v63, %v389_v52  ;;  %v404_v63 = vld [vmem:[#allocation2 + $0x30] sm:$0xff] }
  0xdb   :  { %v1549_v0 = vpop.eup %1548 }
  0xdc   :  { %v400_v4 = vmul.f32 %v1549_v0, %v394_v56 }
  0xde   :  { %v406_v48 = vpack.c.bf16 %v400_v4, %v400_v4 }
  0xe0   :  { %415 = vmatmul.bf16.vlgmr.msrb.gmra.mxu0 %v406_v48  ;;  %428 = vmatmul.bf16.vlgmr.msrb.gmra.mxu1 %v406_v48 }
  0xe1   :  { %441 = vmatmul.bf16.vlgmr.msrb.gmra.mxu2 %v406_v48  ;;  %454 = vmatmul.bf16.vlgmr.msrb.gmra.mxu3 %v406_v48 }
  0xe2   :  { %665 = vmatpush.bf16.msrb.mxu0 %v1834_v3  ;;  %678 = vmatpush.bf16.msrb.mxu1 %v1836_v7 }
  0xe3   :  { %691 = vmatpush.bf16.msrb.mxu2 %v1849_v21  ;;  %704 = vmatpush.bf16.msrb.mxu3 %v1838_v8 }
  0xe6   :  { %666 = vmatpush.bf16.msrb.mxu0 %v1841_v12  ;;  %679 = vmatpush.bf16.msrb.mxu1 %v1845_v16 }
  0xe7   :  { %692 = vmatpush.bf16.msrb.mxu2 %v1861_v34  ;;  %705 = vmatpush.bf16.msrb.mxu3 %v1847_v17 }
  0xea   :  { %667 = vmatpush.bf16.msrb.mxu0 %v1853_v28  ;;  %680 = vmatpush.bf16.msrb.mxu1 %v1857_v32 }
  0xeb   :  { %693 = vmatpush.bf16.msrb.mxu2 %v1867_v42  ;;  %706 = vmatpush.bf16.msrb.mxu3 %v1859_v33 }
  0xee   :  { %668 = vmatpush.bf16.msrb.mxu0 %v1865_v41  ;;  %681 = vmatpush.bf16.msrb.mxu1 %v1871_v45 }
  0xef   :  { %694 = vmatpush.bf16.msrb.mxu2 %v1879_v54  ;;  %707 = vmatpush.bf16.msrb.mxu3 %v1873_v46 }
  0xf2   :  { %669 = vmatpush.bf16.msrb.mxu0 %v1877_v53  ;;  %682 = vmatpush.bf16.msrb.mxu1 %v1883_v57 }
  0xf3   :  { %695 = vmatpush.bf16.msrb.mxu2 %v1891_v2  ;;  %708 = vmatpush.bf16.msrb.mxu3 %v1885_v58 }
  0xf6   :  { %670 = vmatpush.bf16.msrb.mxu0 %v1889_v1  ;;  %683 = vmatpush.bf16.msrb.mxu1 %v1895_v6 }
  0xf7   :  { %696 = vmatpush.bf16.msrb.mxu2 %v1903_v20  ;;  %709 = vmatpush.bf16.msrb.mxu3 %v1897_v9 }
  0xfa   :  { %671 = vmatpush.bf16.msrb.mxu0 %v1901_v19  ;;  %684 = vmatpush.bf16.msrb.mxu1 %v1907_v24 }
  0xfb   :  { %697 = vmatpush.bf16.msrb.mxu2 %v1915_v37  ;;  %710 = vmatpush.bf16.msrb.mxu3 %v1909_v25 }
  0xfe   :  { %672 = vmatpush.bf16.msrb.mxu0 %v1913_v36  ;;  %685 = vmatpush.bf16.msrb.mxu1 %v1919_v38 }
  0xff   :  { %698 = vmatpush.bf16.msrb.mxu2 %v1927_v44  ;;  %711 = vmatpush.bf16.msrb.mxu3 %v1921_v39 }
 0x15d   :  { %v416_v11 = vpop.f32.mrf.mxu0  ;;  %v429_v13 = vpop.f32.mrf.mxu1 }
 0x15e   :  { %v459_v14 = vadd.f32 %v416_v11, %v402_v51  ;;  %v460_v15 = vadd.f32 %v429_v13, %v403_v10 }
 0x160   :  { %v463_v18 = vadd.f32 %v459_v14, %v1994_v50  ;;  %v464_v22 = vadd.f32 %v460_v15, %v1996_v55 }
 0x162   :  { %v1471_v23 = vmul.f32 -1.442695, %v463_v18  ;;  %v1472_v26 = vmul.f32 -1.442695, %v464_v22 }
 0x164   :  { %1550 = vpow2.f32 %v1471_v23  ;;  %v442_v31 = vpop.f32.mrf.mxu2  ;;  %v455_v35 = vpop.f32.mrf.mxu3 }
 0x165   :  { %1552 = vpow2.f32 %v1472_v26  ;;  %v462_v43 = vadd.f32 %v455_v35, %v405_v27  ;;  %v418_v47 = vpop.f32.mrf.mxu0  ;;  %v431_v49 = vpop.f32.mrf.mxu1  ;;  %v461_v4 = vadd.f32 %v442_v31, %v404_v63 }
 0x167   :  { %v466_v59 = vadd.f32 %v462_v43, %v2000_v5  ;;  %v465_v11 = vadd.f32 %v461_v4, %v2003_v40 }
 0x169   :  { %v1473_v60 = vmul.f32 -1.442695, %v466_v59 }
 0x16a   :  { %v1551_v29 = vpop.eup %1550 }
 0x16b   :  { %v1553_v30 = vpop.eup %1552  ;;  %v470_v62 = vadd.f32 1.0, %v1551_v29  ;;  %1554 = vpow2.f32 %v1473_v60 }
 0x16c   :  { %v489_v52 = vadd.f32 1.0, %v1553_v30  ;;  %v444_v0 = vpop.f32.mrf.mxu2  ;;  %v457_v56 = vpop.f32.mrf.mxu3 }
 0x16d   :  { %1556 = vrcp.f32 %v470_v62  ;;  %v482_v23 = vand.u32 2147483648, %v470_v62  ;;  %v480_v35 = vand.u32 2147483647, %v470_v62  ;;  %vm476_vm14 = vweird.f32 %v470_v62 }
 0x16e   :  { %1558 = vrcp.f32 %v489_v52  ;;  %v501_v26 = vand.u32 2147483648, %v489_v52  ;;  %v499_v31 = vand.u32 2147483647, %v489_v52  ;;  %vm495_vm15 = vweird.f32 %v489_v52 }
 0x16f   :  { %v483_v59 = vor.u32 1.1754944e-38, %v482_v23  ;;  %vm481_vm2 = vcmp.eq.f32.partialorder %v480_v35, 8.507059e+37 }
 0x170   :  { %v502_v30 = vor.u32 1.1754944e-38, %v501_v26  ;;  %vm500_vm3 = vcmp.eq.f32.partialorder %v499_v31, 8.507059e+37 }
 0x171   :  { %v1555_v48 = vpop.eup %1554 }
 0x172   :  { %v509_v51 = vadd.f32 1.0, %v1555_v48 }
 0x173   :  { %v1557_v10 = vpop.eup %1556 }
 0x174   :  { %v1559_v13 = vpop.eup %1558  ;;  %v472_v14 = vmul.f32 %v1557_v10, %v470_v62  ;;  %1560 = vrcp.f32 %v509_v51  ;;  %vm477_vm12 = vweird.f32 %v1557_v10  ;;  %vm515_vm5 = vweird.f32 %v509_v51 }
 0x175   :  { %v491_v15 = vmul.f32 %v1559_v13, %v489_v52  ;;  %1562 = vtanh.f32 %v465_v11  ;;  %vm496_vm13 = vweird.f32 %v1559_v13  ;;  %vm478_vm0 = vmor %vm476_vm14, %vm477_vm12 }
 0x176   :  { %v473_v18 = vsub.f32 1.0, %v472_v14  ;;  %vm497_vm1 = vmor %vm495_vm15, %vm496_vm13 }
 0x177   :  { %v492_v22 = vsub.f32 1.0, %v491_v15 }
 0x178   :  { %v474_v27 = vmul.f32 %v1557_v10, %v473_v18 }
 0x179   :  { %v493_v43 = vmul.f32 %v1559_v13, %v492_v22  ;;  %v521_v22 = vand.u32 2147483648, %v509_v51 }
 0x17a   :  { %v1561_v47 = vpop.eup %1560  ;;  %v475_v49 = vadd.f32 %v1557_v10, %v474_v27 }
 0x17b   :  { %v494_v60 = vadd.f32 %v1559_v13, %v493_v43  ;;  %v511_v29 = vmul.f32 %v1561_v47, %v509_v51  ;;  %v1563_v0 = vpop.eup %1562  ;;  %vm516_vm4 = vweird.f32 %v1561_v47  ;;  %v522_v26 = vor.u32 1.1754944e-38, %v521_v22 }
 0x17c   :  { %v479_v63 = vsel %vm478_vm0, %v1557_v10, %v475_v49  ;;  %v519_v10 = vand.u32 2147483647, %v509_v51  ;;  %vm517_vm6 = vmor %vm515_vm5, %vm516_vm4  ;;  %v532_v51 = vld [vmem:[#allocation2 + $0x48] sm:$0xff] }
 0x17d   :  { %v484_v56 = vsel %vm481_vm2, %v483_v59, %v479_v63  ;;  %v498_v4 = vsel %vm497_vm1, %v1559_v13, %v494_v60  ;;  %v512_v48 = vsub.f32 1.0, %v511_v29 }
 0x17e   :  { %v503_v11 = vsel %vm500_vm3, %v502_v30, %v498_v4  ;;  %v526_v14 = vmul.f32 %v1563_v0, %v484_v56  ;;  %vm520_vm7 = vcmp.eq.f32.partialorder %v519_v10, 8.507059e+37  ;;  %v534_v0 = vld [vmem:[#allocation2 + $0x58] sm:$0xff] }
 0x17f   :  { %v525_v15 = vmul.f32 %v503_v11, %v2006_v61  ;;  %v513_v18 = vmul.f32 %v1561_v47, %v512_v48  ;;  %v531_v61 = vld [vmem:[#allocation2 + $0x40] sm:$0xff] }
 0x181   :  { %v2046_v62 = vadd.f32 %v526_v14, %v525_v15  ;;  %v514_v52 = vadd.f32 %v1561_v47, %v513_v18 }
 0x183   :  { %1564 = vtanh.f32 %v2046_v62  ;;  %v518_v23 = vsel %vm517_vm6, %v1561_v47, %v514_v52 }
 0x184   :  { %v523_v27 = vsel %vm520_vm7, %v522_v26, %v518_v23  ;;  %v533_v26 = vld [vmem:[#allocation2 + $0x50] sm:$0xff] }
 0x189   :  { %v1565_v13 = vpop.eup %1564 }
 0x18a   :  { %v529_v35 = vmul.f32 %v1565_v13, %v523_v27 }
 0x18c   :  { %v535_v43 = vpack.c.bf16 %v529_v35, %v529_v35 }
 0x18e   :  { %544 = vmatmul.bf16.vlgmr.msra.gmra.mxu0 %v535_v43  ;;  %557 = vmatmul.bf16.vlgmr.msra.gmra.mxu1 %v535_v43 }
 0x18f   :  { %570 = vmatmul.bf16.vlgmr.msra.gmra.mxu2 %v535_v43  ;;  %583 = vmatmul.bf16.vlgmr.msra.gmra.mxu3 %v535_v43 }
 0x190   :  { %794 = vmatpush.bf16.msra.mxu0 %v1834_v3  ;;  %807 = vmatpush.bf16.msra.mxu1 %v1836_v7 }
 0x191   :  { %820 = vmatpush.bf16.msra.mxu2 %v1849_v21  ;;  %833 = vmatpush.bf16.msra.mxu3 %v1838_v8 }
 0x194   :  { %795 = vmatpush.bf16.msra.mxu0 %v1841_v12  ;;  %808 = vmatpush.bf16.msra.mxu1 %v1845_v16 }
 0x195   :  { %821 = vmatpush.bf16.msra.mxu2 %v1861_v34  ;;  %834 = vmatpush.bf16.msra.mxu3 %v1847_v17 }
 0x198   :  { %796 = vmatpush.bf16.msra.mxu0 %v1853_v28  ;;  %809 = vmatpush.bf16.msra.mxu1 %v1857_v32 }
 0x199   :  { %822 = vmatpush.bf16.msra.mxu2 %v1867_v42  ;;  %835 = vmatpush.bf16.msra.mxu3 %v1859_v33 }
 0x19c   :  { %797 = vmatpush.bf16.msra.mxu0 %v1865_v41  ;;  %810 = vmatpush.bf16.msra.mxu1 %v1871_v45 }
 0x19d   :  { %823 = vmatpush.bf16.msra.mxu2 %v1879_v54  ;;  %836 = vmatpush.bf16.msra.mxu3 %v1873_v46 }
 0x1a0   :  { %798 = vmatpush.bf16.msra.mxu0 %v1877_v53  ;;  %811 = vmatpush.bf16.msra.mxu1 %v1883_v57 }
 0x1a1   :  { %824 = vmatpush.bf16.msra.mxu2 %v1891_v2  ;;  %837 = vmatpush.bf16.msra.mxu3 %v1885_v58 }
 0x1a4   :  { %799 = vmatpush.bf16.msra.mxu0 %v1889_v1  ;;  %812 = vmatpush.bf16.msra.mxu1 %v1895_v6 }
 0x1a5   :  { %825 = vmatpush.bf16.msra.mxu2 %v1903_v20  ;;  %838 = vmatpush.bf16.msra.mxu3 %v1897_v9 }
 0x1a8   :  { %800 = vmatpush.bf16.msra.mxu0 %v1901_v19  ;;  %813 = vmatpush.bf16.msra.mxu1 %v1907_v24 }
 0x1a9   :  { %826 = vmatpush.bf16.msra.mxu2 %v1915_v37  ;;  %839 = vmatpush.bf16.msra.mxu3 %v1909_v25 }
 0x1ac   :  { %801 = vmatpush.bf16.msra.mxu0 %v1913_v36  ;;  %814 = vmatpush.bf16.msra.mxu1 %v1919_v38 }
 0x1ad   :  { %827 = vmatpush.bf16.msra.mxu2 %v1927_v44  ;;  %840 = vmatpush.bf16.msra.mxu3 %v1921_v39 }
 0x20b   :  { %v545_v31 = vpop.f32.mrf.mxu0  ;;  %v558_v47 = vpop.f32.mrf.mxu1 }
 0x20c   :  { %v588_v49 = vadd.f32 %v545_v31, %v531_v61  ;;  %v589_v59 = vadd.f32 %v558_v47, %v532_v51 }
 0x20e   :  { %v592_v60 = vadd.f32 %v588_v49, %v1994_v50  ;;  %v593_v29 = vadd.f32 %v589_v59, %v1996_v55 }
 0x210   :  { %v1474_v30 = vmul.f32 -1.442695, %v592_v60  ;;  %v1475_v63 = vmul.f32 -1.442695, %v593_v29 }
 0x212   :  { %1566 = vpow2.f32 %v1474_v30  ;;  %v571_v56 = vpop.f32.mrf.mxu2  ;;  %v584_v4 = vpop.f32.mrf.mxu3 }
 0x213   :  { %1568 = vpow2.f32 %v1475_v63  ;;  %v591_v48 = vadd.f32 %v584_v4, %v534_v0  ;;  %v547_v11 = vpop.f32.mrf.mxu0  ;;  %v560_v14 = vpop.f32.mrf.mxu1  ;;  %v590_v35 = vadd.f32 %v571_v56, %v533_v26 }
 0x215   :  { %v595_v15 = vadd.f32 %v591_v48, %v2000_v5  ;;  %v594_v31 = vadd.f32 %v590_v35, %v2003_v40 }
 0x217   :  { %v1476_v18 = vmul.f32 -1.442695, %v595_v15 }
 0x218   :  { %v1567_v52 = vpop.eup %1566 }
 0x219   :  { %v1569_v22 = vpop.eup %1568  ;;  %v599_v10 = vadd.f32 1.0, %v1567_v52  ;;  %1570 = vpow2.f32 %v1476_v18 }
 0x21a   :  { %v618_v23 = vadd.f32 1.0, %v1569_v22  ;;  %v573_v13 = vpop.f32.mrf.mxu2  ;;  %v586_v27 = vpop.f32.mrf.mxu3 }
 0x21b   :  { %1572 = vrcp.f32 %v599_v10  ;;  %v611_v30 = vand.u32 2147483648, %v599_v10  ;;  %v609_v4 = vand.u32 2147483647, %v599_v10  ;;  %vm605_vm10 = vweird.f32 %v599_v10 }
 0x21c   :  { %1574 = vrcp.f32 %v618_v23  ;;  %v630_v63 = vand.u32 2147483648, %v618_v23  ;;  %v628_v56 = vand.u32 2147483647, %v618_v23  ;;  %vm624_vm11 = vweird.f32 %v618_v23 }
 0x21d   :  { %v612_v15 = vor.u32 1.1754944e-38, %v611_v30  ;;  %vm610_vm14 = vcmp.eq.f32.partialorder %v609_v4, 8.507059e+37 }
 0x21e   :  { %v631_v22 = vor.u32 1.1754944e-38, %v630_v63  ;;  %vm629_vm15 = vcmp.eq.f32.partialorder %v628_v56, 8.507059e+37 }
 0x21f   :  { %v1571_v43 = vpop.eup %1570 }
 0x220   :  { %v638_v61 = vadd.f32 1.0, %v1571_v43 }
 0x221   :  { %v1573_v51 = vpop.eup %1572 }
 0x222   :  { %v1575_v47 = vpop.eup %1574  ;;  %v601_v49 = vmul.f32 %v1573_v51, %v599_v10  ;;  %1576 = vrcp.f32 %v638_v61  ;;  %vm606_vm8 = vweird.f32 %v1573_v51  ;;  %vm644_vm1 = vweird.f32 %v638_v61 }
 0x223   :  { %v620_v59 = vmul.f32 %v1575_v47, %v618_v23  ;;  %1578 = vtanh.f32 %v594_v31  ;;  %vm625_vm9 = vweird.f32 %v1575_v47  ;;  %vm607_vm12 = vmor %vm605_vm10, %vm606_vm8 }
 0x224   :  { %v602_v60 = vsub.f32 1.0, %v601_v49  ;;  %vm626_vm13 = vmor %vm624_vm11, %vm625_vm9 }
 0x225   :  { %v621_v29 = vsub.f32 1.0, %v620_v59 }
 0x226   :  { %v603_v0 = vmul.f32 %v1573_v51, %v602_v60 }
 0x227   :  { %v622_v48 = vmul.f32 %v1575_v47, %v621_v29  ;;  %v650_v29 = vand.u32 2147483648, %v638_v61 }
 0x228   :  { %v1577_v11 = vpop.eup %1576  ;;  %v604_v14 = vadd.f32 %v1573_v51, %v603_v0 }
 0x229   :  { %v623_v18 = vadd.f32 %v1575_v47, %v622_v48  ;;  %v640_v52 = vmul.f32 %v1577_v11, %v638_v61  ;;  %v1579_v13 = vpop.eup %1578  ;;  %vm645_vm0 = vweird.f32 %v1577_v11  ;;  %v651_v63 = vor.u32 1.1754944e-38, %v650_v29 }
 0x22a   :  { %v608_v26 = vsel %vm607_vm12, %v1573_v51, %v604_v14  ;;  %v648_v51 = vand.u32 2147483647, %v638_v61  ;;  %vm646_vm2 = vmor %vm644_vm1, %vm645_vm0  ;;  %v661_v61 = vld [vmem:[#allocation2 + $0x68] sm:$0xff] }
 0x22b   :  { %v613_v27 = vsel %vm610_vm14, %v612_v15, %v608_v26  ;;  %v627_v35 = vsel %vm626_vm13, %v1575_v47, %v623_v18  ;;  %v641_v43 = vsub.f32 1.0, %v640_v52 }
 0x22c   :  { %v632_v31 = vsel %vm629_vm15, %v631_v22, %v627_v35  ;;  %v655_v49 = vmul.f32 %v1579_v13, %v613_v27  ;;  %vm649_vm3 = vcmp.eq.f32.partialorder %v648_v51, 8.507059e+37  ;;  %v663_v13 = vld [vmem:[#allocation2 + $0x78] sm:$0xff] }
 0x22d   :  { %v654_v59 = vmul.f32 %v632_v31, %v2046_v62  ;;  %v642_v60 = vmul.f32 %v1577_v11, %v641_v43  ;;  %v660_v62 = vld [vmem:[#allocation2 + $0x60] sm:$0xff] }
 0x22f   :  { %v2086_v10 = vadd.f32 %v655_v49, %v654_v59  ;;  %v643_v23 = vadd.f32 %v1577_v11, %v642_v60 }
 0x231   :  { %1580 = vtanh.f32 %v2086_v10  ;;  %v647_v30 = vsel %vm646_vm2, %v1577_v11, %v643_v23 }
 0x232   :  { %v652_v0 = vsel %vm649_vm3, %v651_v63, %v647_v30  ;;  %v662_v63 = vld [vmem:[#allocation2 + $0x70] sm:$0xff] }
 0x237   :  { %v1581_v47 = vpop.eup %1580 }
 0x238   :  { %v658_v4 = vmul.f32 %v1581_v47, %v652_v0 }
 0x23a   :  { %v664_v48 = vpack.c.bf16 %v658_v4, %v658_v4 }
 0x23c   :  { %673 = vmatmul.bf16.vlgmr.msrb.gmra.mxu0 %v664_v48  ;;  %686 = vmatmul.bf16.vlgmr.msrb.gmra.mxu1 %v664_v48 }
 0x23d   :  { %699 = vmatmul.bf16.vlgmr.msrb.gmra.mxu2 %v664_v48  ;;  %712 = vmatmul.bf16.vlgmr.msrb.gmra.mxu3 %v664_v48 }
 0x23e   :  { %923 = vmatpush.bf16.msrb.mxu0 %v1834_v3  ;;  %936 = vmatpush.bf16.msrb.mxu1 %v1836_v7 }
 0x23f   :  { %949 = vmatpush.bf16.msrb.mxu2 %v1849_v21  ;;  %962 = vmatpush.bf16.msrb.mxu3 %v1838_v8 }
 0x242   :  { %924 = vmatpush.bf16.msrb.mxu0 %v1841_v12  ;;  %937 = vmatpush.bf16.msrb.mxu1 %v1845_v16 }
 0x243   :  { %950 = vmatpush.bf16.msrb.mxu2 %v1861_v34  ;;  %963 = vmatpush.bf16.msrb.mxu3 %v1847_v17 }
 0x246   :  { %925 = vmatpush.bf16.msrb.mxu0 %v1853_v28  ;;  %938 = vmatpush.bf16.msrb.mxu1 %v1857_v32 }
 0x247   :  { %951 = vmatpush.bf16.msrb.mxu2 %v1867_v42  ;;  %964 = vmatpush.bf16.msrb.mxu3 %v1859_v33 }
 0x24a   :  { %926 = vmatpush.bf16.msrb.mxu0 %v1865_v41  ;;  %939 = vmatpush.bf16.msrb.mxu1 %v1871_v45 }
 0x24b   :  { %952 = vmatpush.bf16.msrb.mxu2 %v1879_v54  ;;  %965 = vmatpush.bf16.msrb.mxu3 %v1873_v46 }
 0x24e   :  { %927 = vmatpush.bf16.msrb.mxu0 %v1877_v53  ;;  %940 = vmatpush.bf16.msrb.mxu1 %v1883_v57 }
 0x24f   :  { %953 = vmatpush.bf16.msrb.mxu2 %v1891_v2  ;;  %966 = vmatpush.bf16.msrb.mxu3 %v1885_v58 }
 0x252   :  { %928 = vmatpush.bf16.msrb.mxu0 %v1889_v1  ;;  %941 = vmatpush.bf16.msrb.mxu1 %v1895_v6 }
 0x253   :  { %954 = vmatpush.bf16.msrb.mxu2 %v1903_v20  ;;  %967 = vmatpush.bf16.msrb.mxu3 %v1897_v9 }
 0x256   :  { %929 = vmatpush.bf16.msrb.mxu0 %v1901_v19  ;;  %942 = vmatpush.bf16.msrb.mxu1 %v1907_v24 }
 0x257   :  { %955 = vmatpush.bf16.msrb.mxu2 %v1915_v37  ;;  %968 = vmatpush.bf16.msrb.mxu3 %v1909_v25 }
 0x25a   :  { %930 = vmatpush.bf16.msrb.mxu0 %v1913_v36  ;;  %943 = vmatpush.bf16.msrb.mxu1 %v1919_v38 }
 0x25b   :  { %956 = vmatpush.bf16.msrb.mxu2 %v1927_v44  ;;  %969 = vmatpush.bf16.msrb.mxu3 %v1921_v39 }
 0x2b9   :  { %v674_v56 = vpop.f32.mrf.mxu0  ;;  %v687_v11 = vpop.f32.mrf.mxu1 }
 0x2ba   :  { %v717_v14 = vadd.f32 %v674_v56, %v660_v62  ;;  %v718_v15 = vadd.f32 %v687_v11, %v661_v61 }
 0x2bc   :  { %v721_v18 = vadd.f32 %v717_v14, %v1994_v50  ;;  %v722_v52 = vadd.f32 %v718_v15, %v1996_v55 }
 0x2be   :  { %v1477_v22 = vmul.f32 -1.442695, %v721_v18  ;;  %v1478_v26 = vmul.f32 -1.442695, %v722_v52 }
 0x2c0   :  { %1582 = vpow2.f32 %v1477_v22  ;;  %v700_v27 = vpop.f32.mrf.mxu2  ;;  %v713_v35 = vpop.f32.mrf.mxu3 }
 0x2c1   :  { %1584 = vpow2.f32 %v1478_v26  ;;  %v720_v43 = vadd.f32 %v713_v35, %v663_v13  ;;  %v676_v31 = vpop.f32.mrf.mxu0  ;;  %v689_v49 = vpop.f32.mrf.mxu1  ;;  %v719_v4 = vadd.f32 %v700_v27, %v662_v63 }
 0x2c3   :  { %v724_v59 = vadd.f32 %v720_v43, %v2000_v5  ;;  %v723_v56 = vadd.f32 %v719_v4, %v2003_v40 }
 0x2c5   :  { %v1479_v60 = vmul.f32 -1.442695, %v724_v59 }
 0x2c6   :  { %v1583_v23 = vpop.eup %1582 }
 0x2c7   :  { %v1585_v29 = vpop.eup %1584  ;;  %v728_v51 = vadd.f32 1.0, %v1583_v23  ;;  %1586 = vpow2.f32 %v1479_v60 }
 0x2c8   :  { %v747_v30 = vadd.f32 1.0, %v1585_v29  ;;  %v702_v47 = vpop.f32.mrf.mxu2  ;;  %v715_v0 = vpop.f32.mrf.mxu3 }
 0x2c9   :  { %1588 = vrcp.f32 %v728_v51  ;;  %v740_v22 = vand.u32 2147483648, %v728_v51  ;;  %v738_v35 = vand.u32 2147483647, %v728_v51  ;;  %vm734_vm6 = vweird.f32 %v728_v51 }
 0x2ca   :  { %1590 = vrcp.f32 %v747_v30  ;;  %v759_v26 = vand.u32 2147483648, %v747_v30  ;;  %v757_v27 = vand.u32 2147483647, %v747_v30  ;;  %vm753_vm7 = vweird.f32 %v747_v30 }
 0x2cb   :  { %v741_v59 = vor.u32 1.1754944e-38, %v740_v22  ;;  %vm739_vm10 = vcmp.eq.f32.partialorder %v738_v35, 8.507059e+37 }
 0x2cc   :  { %v760_v29 = vor.u32 1.1754944e-38, %v759_v26  ;;  %vm758_vm11 = vcmp.eq.f32.partialorder %v757_v27, 8.507059e+37 }
 0x2cd   :  { %v1587_v48 = vpop.eup %1586 }
 0x2ce   :  { %v767_v62 = vadd.f32 1.0, %v1587_v48 }
 0x2cf   :  { %v1589_v61 = vpop.eup %1588 }
 0x2d0   :  { %v1591_v11 = vpop.eup %1590  ;;  %v730_v14 = vmul.f32 %v1589_v61, %v728_v51  ;;  %1592 = vrcp.f32 %v767_v62  ;;  %vm735_vm4 = vweird.f32 %v1589_v61  ;;  %vm773_vm13 = vweird.f32 %v767_v62 }
 0x2d1   :  { %v749_v15 = vmul.f32 %v1591_v11, %v747_v30  ;;  %1594 = vtanh.f32 %v723_v56  ;;  %vm754_vm5 = vweird.f32 %v1591_v11  ;;  %vm736_vm8 = vmor %vm734_vm6, %vm735_vm4 }
 0x2d2   :  { %v731_v18 = vsub.f32 1.0, %v730_v14  ;;  %vm755_vm9 = vmor %vm753_vm7, %vm754_vm5 }
 0x2d3   :  { %v750_v52 = vsub.f32 1.0, %v749_v15 }
 0x2d4   :  { %v732_v13 = vmul.f32 %v1589_v61, %v731_v18 }
 0x2d5   :  { %v751_v43 = vmul.f32 %v1591_v11, %v750_v52  ;;  %v779_v52 = vand.u32 2147483648, %v767_v62 }
 0x2d6   :  { %v1593_v31 = vpop.eup %1592  ;;  %v733_v49 = vadd.f32 %v1589_v61, %v732_v13 }
 0x2d7   :  { %v752_v60 = vadd.f32 %v1591_v11, %v751_v43  ;;  %v769_v23 = vmul.f32 %v1593_v31, %v767_v62  ;;  %v1595_v47 = vpop.eup %1594  ;;  %vm774_vm12 = vweird.f32 %v1593_v31  ;;  %v780_v26 = vor.u32 1.1754944e-38, %v779_v52 }
 0x2d8   :  { %v737_v63 = vsel %vm736_vm8, %v1589_v61, %v733_v49  ;;  %v777_v61 = vand.u32 2147483647, %v767_v62  ;;  %vm775_vm14 = vmor %vm773_vm13, %vm774_vm12  ;;  %v790_v62 = vld [vmem:[#allocation2 + $0x88] sm:$0xff] }
 0x2d9   :  { %v742_v0 = vsel %vm739_vm10, %v741_v59, %v737_v63  ;;  %v756_v4 = vsel %vm755_vm9, %v1591_v11, %v752_v60  ;;  %v770_v48 = vsub.f32 1.0, %v769_v23 }
 0x2da   :  { %v761_v56 = vsel %vm758_vm11, %v760_v29, %v756_v4  ;;  %v784_v14 = vmul.f32 %v1595_v47, %v742_v0  ;;  %vm778_vm15 = vcmp.eq.f32.partialorder %v777_v61, 8.507059e+37  ;;  %v792_v47 = vld [vmem:[#allocation2 + $0x98] sm:$0xff] }
 0x2db   :  { %v783_v15 = vmul.f32 %v761_v56, %v2086_v10  ;;  %v771_v18 = vmul.f32 %v1593_v31, %v770_v48  ;;  %v789_v10 = vld [vmem:[#allocation2 + $0x80] sm:$0xff] }
 0x2dd   :  { %v2126_v51 = vadd.f32 %v784_v14, %v783_v15  ;;  %v772_v30 = vadd.f32 %v1593_v31, %v771_v18 }
 0x2df   :  { %1596 = vtanh.f32 %v2126_v51  ;;  %v776_v22 = vsel %vm775_vm14, %v1593_v31, %v772_v30 }
 0x2e0   :  { %v781_v13 = vsel %vm778_vm15, %v780_v26, %v776_v22  ;;  %v791_v26 = vld [vmem:[#allocation2 + $0x90] sm:$0xff] }
 0x2e5   :  { %v1597_v11 = vpop.eup %1596 }
 0x2e6   :  { %v787_v35 = vmul.f32 %v1597_v11, %v781_v13 }
 0x2e8   :  { %v793_v43 = vpack.c.bf16 %v787_v35, %v787_v35 }
 0x2ea   :  { %802 = vmatmul.bf16.vlgmr.msra.gmra.mxu0 %v793_v43  ;;  %815 = vmatmul.bf16.vlgmr.msra.gmra.mxu1 %v793_v43 }
 0x2eb   :  { %828 = vmatmul.bf16.vlgmr.msra.gmra.mxu2 %v793_v43  ;;  %841 = vmatmul.bf16.vlgmr.msra.gmra.mxu3 %v793_v43 }
 0x2ec   :  { %1052 = vmatpush.bf16.msra.mxu0 %v1834_v3  ;;  %1065 = vmatpush.bf16.msra.mxu1 %v1836_v7 }
 0x2ed   :  { %1078 = vmatpush.bf16.msra.mxu2 %v1849_v21  ;;  %1091 = vmatpush.bf16.msra.mxu3 %v1838_v8 }
 0x2f0   :  { %1053 = vmatpush.bf16.msra.mxu0 %v1841_v12  ;;  %1066 = vmatpush.bf16.msra.mxu1 %v1845_v16 }
 0x2f1   :  { %1079 = vmatpush.bf16.msra.mxu2 %v1861_v34  ;;  %1092 = vmatpush.bf16.msra.mxu3 %v1847_v17 }
 0x2f4   :  { %1054 = vmatpush.bf16.msra.mxu0 %v1853_v28  ;;  %1067 = vmatpush.bf16.msra.mxu1 %v1857_v32 }
 0x2f5   :  { %1080 = vmatpush.bf16.msra.mxu2 %v1867_v42  ;;  %1093 = vmatpush.bf16.msra.mxu3 %v1859_v33 }
 0x2f8   :  { %1055 = vmatpush.bf16.msra.mxu0 %v1865_v41  ;;  %1068 = vmatpush.bf16.msra.mxu1 %v1871_v45 }
 0x2f9   :  { %1081 = vmatpush.bf16.msra.mxu2 %v1879_v54  ;;  %1094 = vmatpush.bf16.msra.mxu3 %v1873_v46 }
 0x2fc   :  { %1056 = vmatpush.bf16.msra.mxu0 %v1877_v53  ;;  %1069 = vmatpush.bf16.msra.mxu1 %v1883_v57 }
 0x2fd   :  { %1082 = vmatpush.bf16.msra.mxu2 %v1891_v2  ;;  %1095 = vmatpush.bf16.msra.mxu3 %v1885_v58 }
 0x300   :  { %1057 = vmatpush.bf16.msra.mxu0 %v1889_v1  ;;  %1070 = vmatpush.bf16.msra.mxu1 %v1895_v6 }
 0x301   :  { %1083 = vmatpush.bf16.msra.mxu2 %v1903_v20  ;;  %1096 = vmatpush.bf16.msra.mxu3 %v1897_v9 }
 0x304   :  { %1058 = vmatpush.bf16.msra.mxu0 %v1901_v19  ;;  %1071 = vmatpush.bf16.msra.mxu1 %v1907_v24 }
 0x305   :  { %1084 = vmatpush.bf16.msra.mxu2 %v1915_v37  ;;  %1097 = vmatpush.bf16.msra.mxu3 %v1909_v25 }
 0x308   :  { %1059 = vmatpush.bf16.msra.mxu0 %v1913_v36  ;;  %1072 = vmatpush.bf16.msra.mxu1 %v1919_v38 }
 0x309   :  { %1085 = vmatpush.bf16.msra.mxu2 %v1927_v44  ;;  %1098 = vmatpush.bf16.msra.mxu3 %v1921_v39 }
 0x367   :  { %v803_v27 = vpop.f32.mrf.mxu0  ;;  %v816_v31 = vpop.f32.mrf.mxu1 }
 0x368   :  { %v846_v49 = vadd.f32 %v803_v27, %v789_v10  ;;  %v847_v59 = vadd.f32 %v816_v31, %v790_v62 }
 0x36a   :  { %v850_v60 = vadd.f32 %v846_v49, %v1994_v50  ;;  %v851_v23 = vadd.f32 %v847_v59, %v1996_v55 }
 0x36c   :  { %v1480_v29 = vmul.f32 -1.442695, %v850_v60  ;;  %v1481_v63 = vmul.f32 -1.442695, %v851_v23 }
 0x36e   :  { %1598 = vpow2.f32 %v1480_v29  ;;  %v829_v0 = vpop.f32.mrf.mxu2  ;;  %v842_v4 = vpop.f32.mrf.mxu3 }
 0x36f   :  { %1600 = vpow2.f32 %v1481_v63  ;;  %v849_v48 = vadd.f32 %v842_v4, %v792_v47  ;;  %v805_v56 = vpop.f32.mrf.mxu0  ;;  %v818_v14 = vpop.f32.mrf.mxu1  ;;  %v848_v35 = vadd.f32 %v829_v0, %v791_v26 }
 0x371   :  { %v853_v15 = vadd.f32 %v849_v48, %v2000_v5  ;;  %v852_v27 = vadd.f32 %v848_v35, %v2003_v40 }
 0x373   :  { %v1482_v18 = vmul.f32 -1.442695, %v853_v15 }
 0x374   :  { %v1599_v30 = vpop.eup %1598 }
 0x375   :  { %v1601_v52 = vpop.eup %1600  ;;  %v857_v61 = vadd.f32 1.0, %v1599_v30  ;;  %1602 = vpow2.f32 %v1482_v18 }
 0x376   :  { %v876_v22 = vadd.f32 1.0, %v1601_v52  ;;  %v831_v11 = vpop.f32.mrf.mxu2  ;;  %v844_v13 = vpop.f32.mrf.mxu3 }
 0x377   :  { %1604 = vrcp.f32 %v857_v61  ;;  %v869_v29 = vand.u32 2147483648, %v857_v61  ;;  %v867_v4 = vand.u32 2147483647, %v857_v61  ;;  %vm863_vm2 = vweird.f32 %v857_v61 }
 0x378   :  { %1606 = vrcp.f32 %v876_v22  ;;  %v888_v63 = vand.u32 2147483648, %v876_v22  ;;  %v886_v0 = vand.u32 2147483647, %v876_v22  ;;  %vm882_vm3 = vweird.f32 %v876_v22 }
 0x379   :  { %v870_v15 = vor.u32 1.1754944e-38, %v869_v29  ;;  %vm868_vm6 = vcmp.eq.f32.partialorder %v867_v4, 8.507059e+37 }
 0x37a   :  { %v889_v52 = vor.u32 1.1754944e-38, %v888_v63  ;;  %vm887_vm7 = vcmp.eq.f32.partialorder %v886_v0, 8.507059e+37 }
 0x37b   :  { %v1603_v43 = vpop.eup %1602 }
 0x37c   :  { %v896_v10 = vadd.f32 1.0, %v1603_v43 }
 0x37d   :  { %v1605_v62 = vpop.eup %1604 }
 0x37e   :  { %v1607_v31 = vpop.eup %1606  ;;  %v859_v49 = vmul.f32 %v1605_v62, %v857_v61  ;;  %1608 = vrcp.f32 %v896_v10  ;;  %vm864_vm0 = vweird.f32 %v1605_v62  ;;  %vm902_vm9 = vweird.f32 %v896_v10 }
 0x37f   :  { %v878_v59 = vmul.f32 %v1607_v31, %v876_v22  ;;  %1610 = vtanh.f32 %v852_v27  ;;  %vm883_vm1 = vweird.f32 %v1607_v31  ;;  %vm865_vm4 = vmor %vm863_vm2, %vm864_vm0 }
 0x380   :  { %v860_v60 = vsub.f32 1.0, %v859_v49  ;;  %vm884_vm5 = vmor %vm882_vm3, %vm883_vm1 }
 0x381   :  { %v879_v23 = vsub.f32 1.0, %v878_v59 }
 0x382   :  { %v861_v47 = vmul.f32 %v1605_v62, %v860_v60 }
 0x383   :  { %v880_v48 = vmul.f32 %v1607_v31, %v879_v23  ;;  %v908_v23 = vand.u32 2147483648, %v896_v10 }
 0x384   :  { %v1609_v56 = vpop.eup %1608  ;;  %v862_v14 = vadd.f32 %v1605_v62, %v861_v47 }
 0x385   :  { %v881_v18 = vadd.f32 %v1607_v31, %v880_v48  ;;  %v898_v30 = vmul.f32 %v1609_v56, %v896_v10  ;;  %v1611_v11 = vpop.eup %1610  ;;  %vm903_vm8 = vweird.f32 %v1609_v56  ;;  %v909_v63 = vor.u32 1.1754944e-38, %v908_v23 }
 0x386   :  { %v866_v26 = vsel %vm865_vm4, %v1605_v62, %v862_v14  ;;  %v906_v62 = vand.u32 2147483647, %v896_v10  ;;  %vm904_vm10 = vmor %vm902_vm9, %vm903_vm8 }
 0x387   :  { %v871_v13 = vsel %vm868_vm6, %v870_v15, %v866_v26  ;;  %v885_v35 = vsel %vm884_vm5, %v1607_v31, %v881_v18  ;;  %v899_v43 = vsub.f32 1.0, %v898_v30 }
 0x388   :  { %v890_v27 = vsel %vm887_vm7, %v889_v52, %v885_v35  ;;  %v913_v49 = vmul.f32 %v1611_v11, %v871_v13  ;;  %vm907_vm11 = vcmp.eq.f32.partialorder %v906_v62, 8.507059e+37 }
 0x389   :  { %v912_v59 = vmul.f32 %v890_v27, %v2126_v51  ;;  %v900_v60 = vmul.f32 %v1609_v56, %v899_v43 }
 0x38b   :  { %v2166_v61 = vadd.f32 %v913_v49, %v912_v59  ;;  %v901_v22 = vadd.f32 %v1609_v56, %v900_v60 }
 0x38d   :  { %1612 = vtanh.f32 %v2166_v61  ;;  %v905_v29 = vsel %vm904_vm10, %v1609_v56, %v901_v22 }
 0x38e   :  { %v910_v47 = vsel %vm907_vm11, %v909_v63, %v905_v29 }
 0x393   :  { %v1613_v31 = vpop.eup %1612 }
 0x394   :  { %v916_v4 = vmul.f32 %v1613_v31, %v910_v47 }
 0x396   :  { %v922_v48 = vpack.c.bf16 %v916_v4, %v916_v4 }
 0x398   :  { %931 = vmatmul.bf16.vlgmr.msrb.gmra.mxu0 %v922_v48  ;;  %944 = vmatmul.bf16.vlgmr.msrb.gmra.mxu1 %v922_v48 }
 0x399   :  { %957 = vmatmul.bf16.vlgmr.msrb.gmra.mxu2 %v922_v48  ;;  %970 = vmatmul.bf16.vlgmr.msrb.gmra.mxu3 %v922_v48 }
 0x39a   :  { %1181 = vmatpush.bf16.msrb.mxu0 %v1834_v3  ;;  %1194 = vmatpush.bf16.msrb.mxu1 %v1836_v7  ;;  %v918_v3 = vld [vmem:[#allocation2 + $0xa0] sm:$0xff]  ;;  %v919_v7 = vld [vmem:[#allocation2 + $0xa8] sm:$0xff] }
 0x39b   :  { %1207 = vmatpush.bf16.msrb.mxu2 %v1849_v21  ;;  %1220 = vmatpush.bf16.msrb.mxu3 %v1838_v8 }
 0x39e   :  { %1182 = vmatpush.bf16.msrb.mxu0 %v1841_v12  ;;  %1195 = vmatpush.bf16.msrb.mxu1 %v1845_v16 }
 0x39f   :  { %1208 = vmatpush.bf16.msrb.mxu2 %v1861_v34  ;;  %1221 = vmatpush.bf16.msrb.mxu3 %v1847_v17  ;;  %v921_v34 = vld [vmem:[#allocation2 + $0xb8] sm:$0xff] }
 0x3a2   :  { %1183 = vmatpush.bf16.msrb.mxu0 %v1853_v28  ;;  %1196 = vmatpush.bf16.msrb.mxu1 %v1857_v32 }
 0x3a3   :  { %1209 = vmatpush.bf16.msrb.mxu2 %v1867_v42  ;;  %1222 = vmatpush.bf16.msrb.mxu3 %v1859_v33 }
 0x3a6   :  { %1184 = vmatpush.bf16.msrb.mxu0 %v1865_v41  ;;  %1197 = vmatpush.bf16.msrb.mxu1 %v1871_v45 }
 0x3a7   :  { %1210 = vmatpush.bf16.msrb.mxu2 %v1879_v54  ;;  %1223 = vmatpush.bf16.msrb.mxu3 %v1873_v46 }
 0x3aa   :  { %1185 = vmatpush.bf16.msrb.mxu0 %v1877_v53  ;;  %1198 = vmatpush.bf16.msrb.mxu1 %v1883_v57 }
 0x3ab   :  { %1211 = vmatpush.bf16.msrb.mxu2 %v1891_v2  ;;  %1224 = vmatpush.bf16.msrb.mxu3 %v1885_v58 }
 0x3ae   :  { %1186 = vmatpush.bf16.msrb.mxu0 %v1889_v1  ;;  %1199 = vmatpush.bf16.msrb.mxu1 %v1895_v6 }
 0x3af   :  { %1212 = vmatpush.bf16.msrb.mxu2 %v1903_v20  ;;  %1225 = vmatpush.bf16.msrb.mxu3 %v1897_v9  ;;  %v920_v9 = vld [vmem:[#allocation2 + $0xb0] sm:$0xff] }
 0x3b2   :  { %1187 = vmatpush.bf16.msrb.mxu0 %v1901_v19  ;;  %1200 = vmatpush.bf16.msrb.mxu1 %v1907_v24 }
 0x3b3   :  { %1213 = vmatpush.bf16.msrb.mxu2 %v1915_v37  ;;  %1226 = vmatpush.bf16.msrb.mxu3 %v1909_v25 }
 0x3b6   :  { %1188 = vmatpush.bf16.msrb.mxu0 %v1913_v36  ;;  %1201 = vmatpush.bf16.msrb.mxu1 %v1919_v38 }
 0x3b7   :  { %1214 = vmatpush.bf16.msrb.mxu2 %v1927_v44  ;;  %1227 = vmatpush.bf16.msrb.mxu3 %v1921_v39 }
 0x415   :  { %v932_v8 = vpop.f32.mrf.mxu0  ;;  %v945_v12 = vpop.f32.mrf.mxu1 }
 0x416   :  { %v975_v16 = vadd.f32 %v932_v8, %v918_v3  ;;  %v976_v17 = vadd.f32 %v945_v12, %v919_v7 }
 0x418   :  { %v979_v21 = vadd.f32 %v975_v16, %v1994_v50  ;;  %v980_v28 = vadd.f32 %v976_v17, %v1996_v55 }
 0x41a   :  { %v1483_v32 = vmul.f32 -1.442695, %v979_v21  ;;  %v1484_v33 = vmul.f32 -1.442695, %v980_v28  ;;  %v1048_v28 = vld [vmem:[#allocation2 + $0xc8] sm:$0xff] }
 0x41c   :  { %1614 = vpow2.f32 %v1483_v32  ;;  %v958_v41 = vpop.f32.mrf.mxu2  ;;  %v971_v42 = vpop.f32.mrf.mxu3 }
 0x41d   :  { %1616 = vpow2.f32 %v1484_v33  ;;  %v978_v45 = vadd.f32 %v971_v42, %v921_v34  ;;  %v934_v46 = vpop.f32.mrf.mxu0  ;;  %v947_v53 = vpop.f32.mrf.mxu1  ;;  %v977_v24 = vadd.f32 %v958_v41, %v920_v9 }
 0x41f   :  { %v982_v54 = vadd.f32 %v978_v45, %v2000_v5  ;;  %v981_v38 = vadd.f32 %v977_v24, %v2003_v40 }
 0x421   :  { %v1485_v57 = vmul.f32 -1.442695, %v982_v54  ;;  %v1050_v54 = vld [vmem:[#allocation2 + $0xd8] sm:$0xff] }
 0x422   :  { %v1615_v58 = vpop.eup %1614 }
 0x423   :  { %v1617_v1 = vpop.eup %1616  ;;  %v986_v2 = vadd.f32 1.0, %v1615_v58  ;;  %1618 = vpow2.f32 %v1485_v57 }
 0x424   :  { %v1005_v6 = vadd.f32 1.0, %v1617_v1  ;;  %v960_v19 = vpop.f32.mrf.mxu2  ;;  %v973_v20 = vpop.f32.mrf.mxu3 }
 0x425   :  { %1620 = vrcp.f32 %v986_v2  ;;  %v998_v56 = vand.u32 2147483648, %v986_v2  ;;  %v996_v18 = vand.u32 2147483647, %v986_v2  ;;  %vm992_vm14 = vweird.f32 %v986_v2 }
 0x426   :  { %1622 = vrcp.f32 %v1005_v6  ;;  %v1017_v14 = vand.u32 2147483648, %v1005_v6  ;;  %v1015_v52 = vand.u32 2147483647, %v1005_v6  ;;  %vm1011_vm15 = vweird.f32 %v1005_v6 }
 0x427   :  { %v999_v13 = vor.u32 1.1754944e-38, %v998_v56  ;;  %vm997_vm2 = vcmp.eq.f32.partialorder %v996_v18, 8.507059e+37 }
 0x428   :  { %v1018_v27 = vor.u32 1.1754944e-38, %v1017_v14  ;;  %vm1016_vm3 = vcmp.eq.f32.partialorder %v1015_v52, 8.507059e+37 }
 0x429   :  { %v1619_v25 = vpop.eup %1618 }
 0x42a   :  { %v1025_v36 = vadd.f32 1.0, %v1619_v25 }
 0x42b   :  { %v1621_v37 = vpop.eup %1620 }
 0x42c   :  { %v1623_v39 = vpop.eup %1622  ;;  %v988_v44 = vmul.f32 %v1621_v37, %v986_v2  ;;  %1624 = vrcp.f32 %v1025_v36  ;;  %vm993_vm12 = vweird.f32 %v1621_v37  ;;  %v1037_v48 = vand.u32 2147483648, %v1025_v36 }
 0x42d   :  { %v1007_v51 = vmul.f32 %v1623_v39, %v1005_v6  ;;  %1626 = vtanh.f32 %v981_v38  ;;  %vm1012_vm13 = vweird.f32 %v1623_v39  ;;  %vm994_vm0 = vmor %vm992_vm14, %vm993_vm12  ;;  %vm1031_vm5 = vweird.f32 %v1025_v36 }
 0x42e   :  { %v989_v10 = vsub.f32 1.0, %v988_v44  ;;  %vm1013_vm1 = vmor %vm1011_vm15, %vm1012_vm13  ;;  %v1035_v3 = vand.u32 2147483647, %v1025_v36  ;;  %v1038_v8 = vor.u32 1.1754944e-38, %v1037_v48 }
 0x42f   :  { %v1008_v0 = vsub.f32 1.0, %v1007_v51 }
 0x430   :  { %v990_v15 = vmul.f32 %v1621_v37, %v989_v10  ;;  %vm1036_vm7 = vcmp.eq.f32.partialorder %v1035_v3, 8.507059e+37 }
 0x431   :  { %v1009_v30 = vmul.f32 %v1623_v39, %v1008_v0 }
 0x432   :  { %v1625_v26 = vpop.eup %1624  ;;  %v991_v11 = vadd.f32 %v1621_v37, %v990_v15 }
 0x433   :  { %v1010_v35 = vadd.f32 %v1623_v39, %v1009_v30  ;;  %v1027_v43 = vmul.f32 %v1625_v26, %v1025_v36  ;;  %v1627_v59 = vpop.eup %1626  ;;  %vm1032_vm4 = vweird.f32 %v1625_v26 }
 0x434   :  { %v995_v49 = vsel %vm994_vm0, %v1621_v37, %v991_v11  ;;  %vm1033_vm6 = vmor %vm1031_vm5, %vm1032_vm4  ;;  %v1049_v37 = vld [vmem:[#allocation2 + $0xd0] sm:$0xff] }
 0x435   :  { %v1000_v60 = vsel %vm997_vm2, %v999_v13, %v995_v49  ;;  %v1014_v22 = vsel %vm1013_vm1, %v1623_v39, %v1010_v35  ;;  %v1028_v23 = vsub.f32 1.0, %v1027_v43 }
 0x436   :  { %v1019_v62 = vsel %vm1016_vm3, %v1018_v27, %v1014_v22  ;;  %v1042_v29 = vmul.f32 %v1627_v59, %v1000_v60 }
 0x437   :  { %v1041_v63 = vmul.f32 %v1019_v62, %v2166_v61  ;;  %v1029_v31 = vmul.f32 %v1625_v26, %v1028_v23  ;;  %v1047_v61 = vld [vmem:[#allocation2 + $0xc0] sm:$0xff] }
 0x439   :  { %v2206_v47 = vadd.f32 %v1042_v29, %v1041_v63  ;;  %v1030_v4 = vadd.f32 %v1625_v26, %v1029_v31 }
 0x43b   :  { %1628 = vtanh.f32 %v2206_v47  ;;  %v1034_v7 = vsel %vm1033_vm6, %v1625_v26, %v1030_v4 }
 0x43c   :  { %v1039_v16 = vsel %vm1036_vm7, %v1038_v8, %v1034_v7 }
 0x441   :  { %v1629_v12 = vpop.eup %1628 }
 0x442   :  { %v1045_v17 = vmul.f32 %v1629_v12, %v1039_v16 }
 0x444   :  { %v1051_v21 = vpack.c.bf16 %v1045_v17, %v1045_v17 }
 0x446   :  { %1060 = vmatmul.bf16.vlgmr.msra.gmra.mxu0 %v1051_v21  ;;  %1073 = vmatmul.bf16.vlgmr.msra.gmra.mxu1 %v1051_v21 }
 0x447   :  { %1086 = vmatmul.bf16.vlgmr.msra.gmra.mxu2 %v1051_v21  ;;  %1099 = vmatmul.bf16.vlgmr.msra.gmra.mxu3 %v1051_v21 }
 0x4c3   :  { %v1061_v32 = vpop.f32.mrf.mxu0  ;;  %v1074_v33 = vpop.f32.mrf.mxu1 }
 0x4c4   :  { %v1104_v34 = vadd.f32 %v1061_v32, %v1047_v61  ;;  %v1105_v41 = vadd.f32 %v1074_v33, %v1048_v28 }
 0x4c6   :  { %v1108_v42 = vadd.f32 %v1104_v34, %v1994_v50  ;;  %v1109_v45 = vadd.f32 %v1105_v41, %v1996_v55 }
 0x4c8   :  { %v1486_v46 = vmul.f32 -1.442695, %v1108_v42  ;;  %v1487_v53 = vmul.f32 -1.442695, %v1109_v45  ;;  %v1177_v45 = vld [vmem:[#allocation2 + $0xe8] sm:$0xff] }
 0x4ca   :  { %1630 = vpow2.f32 %v1486_v46  ;;  %v1087_v57 = vpop.f32.mrf.mxu2  ;;  %v1100_v58 = vpop.f32.mrf.mxu3 }
 0x4cb   :  { %1632 = vpow2.f32 %v1487_v53  ;;  %v1107_v1 = vadd.f32 %v1100_v58, %v1050_v54  ;;  %v1063_v2 = vpop.f32.mrf.mxu0  ;;  %v1076_v6 = vpop.f32.mrf.mxu1  ;;  %v1106_v44 = vadd.f32 %v1087_v57, %v1049_v37 }
 0x4cd   :  { %v1111_v9 = vadd.f32 %v1107_v1, %v2000_v5  ;;  %v1110_v56 = vadd.f32 %v1106_v44, %v2003_v40 }
 0x4cf   :  { %v1488_v19 = vmul.f32 -1.442695, %v1111_v9  ;;  %v1179_v9 = vld [vmem:[#allocation2 + $0xf8] sm:$0xff] }
 0x4d0   :  { %v1631_v20 = vpop.eup %1630 }
 0x4d1   :  { %v1633_v24 = vpop.eup %1632  ;;  %v1115_v25 = vadd.f32 1.0, %v1631_v20  ;;  %1634 = vpow2.f32 %v1488_v19 }
 0x4d2   :  { %v1134_v36 = vadd.f32 1.0, %v1633_v24  ;;  %v1089_v38 = vpop.f32.mrf.mxu2  ;;  %v1102_v39 = vpop.f32.mrf.mxu3 }
 0x4d3   :  { %1636 = vrcp.f32 %v1115_v25  ;;  %v1127_v26 = vand.u32 2147483648, %v1115_v25  ;;  %v1125_v35 = vand.u32 2147483647, %v1115_v25  ;;  %vm1121_vm10 = vweird.f32 %v1115_v25 }
 0x4d4   :  { %1638 = vrcp.f32 %v1134_v36  ;;  %v1146_v11 = vand.u32 2147483648, %v1134_v36  ;;  %v1144_v27 = vand.u32 2147483647, %v1134_v36  ;;  %vm1140_vm11 = vweird.f32 %v1134_v36 }
 0x4d5   :  { %v1128_v60 = vor.u32 1.1754944e-38, %v1127_v26  ;;  %vm1126_vm14 = vcmp.eq.f32.partialorder %v1125_v35, 8.507059e+37 }
 0x4d6   :  { %v1147_v62 = vor.u32 1.1754944e-38, %v1146_v11  ;;  %vm1145_vm15 = vcmp.eq.f32.partialorder %v1144_v27, 8.507059e+37 }
 0x4d7   :  { %v1635_v51 = vpop.eup %1634 }
 0x4d8   :  { %v1154_v10 = vadd.f32 1.0, %v1635_v51 }
 0x4d9   :  { %v1637_v0 = vpop.eup %1636 }
 0x4da   :  { %v1639_v14 = vpop.eup %1638  ;;  %v1117_v15 = vmul.f32 %v1637_v0, %v1115_v25  ;;  %1640 = vrcp.f32 %v1154_v10  ;;  %vm1122_vm8 = vweird.f32 %v1637_v0  ;;  %v1166_v21 = vand.u32 2147483648, %v1154_v10 }
 0x4db   :  { %v1136_v18 = vmul.f32 %v1639_v14, %v1134_v36  ;;  %1642 = vtanh.f32 %v1110_v56  ;;  %vm1141_vm9 = vweird.f32 %v1639_v14  ;;  %vm1123_vm12 = vmor %vm1121_vm10, %vm1122_vm8  ;;  %vm1160_vm1 = vweird.f32 %v1154_v10 }
 0x4dc   :  { %v1118_v30 = vsub.f32 1.0, %v1117_v15  ;;  %vm1142_vm13 = vmor %vm1140_vm11, %vm1141_vm9  ;;  %v1164_v61 = vand.u32 2147483647, %v1154_v10  ;;  %v1167_v32 = vor.u32 1.1754944e-38, %v1166_v21 }
 0x4dd   :  { %v1137_v52 = vsub.f32 1.0, %v1136_v18 }
 0x4de   :  { %v1119_v13 = vmul.f32 %v1637_v0, %v1118_v30  ;;  %vm1165_vm3 = vcmp.eq.f32.partialorder %v1164_v61, 8.507059e+37 }
 0x4df   :  { %v1138_v43 = vmul.f32 %v1639_v14, %v1137_v52 }
 0x4e0   :  { %v1641_v49 = vpop.eup %1640  ;;  %v1120_v59 = vadd.f32 %v1637_v0, %v1119_v13 }
 0x4e1   :  { %v1139_v22 = vadd.f32 %v1639_v14, %v1138_v43  ;;  %v1156_v23 = vmul.f32 %v1641_v49, %v1154_v10  ;;  %v1643_v63 = vpop.eup %1642  ;;  %vm1161_vm0 = vweird.f32 %v1641_v49  ;;  %v1178_v10 = vld [vmem:[#allocation2 + $0xf0] sm:$0xff] }
 0x4e2   :  { %v1124_v29 = vsel %vm1123_vm12, %v1637_v0, %v1120_v59  ;;  %vm1162_vm2 = vmor %vm1160_vm1, %vm1161_vm0 }
 0x4e3   :  { %v1129_v31 = vsel %vm1126_vm14, %v1128_v60, %v1124_v29  ;;  %v1143_v4 = vsel %vm1142_vm13, %v1639_v14, %v1139_v22  ;;  %v1157_v48 = vsub.f32 1.0, %v1156_v23 }
 0x4e4   :  { %v1148_v3 = vsel %vm1145_vm15, %v1147_v62, %v1143_v4  ;;  %v1171_v7 = vmul.f32 %v1643_v63, %v1129_v31 }
 0x4e5   :  { %v1170_v8 = vmul.f32 %v1148_v3, %v2206_v47  ;;  %v1158_v12 = vmul.f32 %v1641_v49, %v1157_v48  ;;  %v1176_v47 = vld [vmem:[#allocation2 + $0xe0] sm:$0xff] }
 0x4e7   :  { %v2214_v16 = vadd.f32 %v1171_v7, %v1170_v8  ;;  %v1159_v17 = vadd.f32 %v1641_v49, %v1158_v12 }
 0x4e9   :  { %1644 = vtanh.f32 %v2214_v16  ;;  %v1163_v28 = vsel %vm1162_vm2, %v1641_v49, %v1159_v17 }
 0x4ea   :  { %v1168_v34 = vsel %vm1165_vm3, %v1167_v32, %v1163_v28 }
 0x4ef   :  { %v1645_v33 = vpop.eup %1644 }
 0x4f0   :  { %v1174_v41 = vmul.f32 %v1645_v33, %v1168_v34 }
 0x4f2   :  { %v1180_v42 = vpack.c.bf16 %v1174_v41, %v1174_v41 }
 0x4f4   :  { %1189 = vmatmul.bf16.vlgmr.msrb.gmra.mxu0 %v1180_v42  ;;  %1202 = vmatmul.bf16.vlgmr.msrb.gmra.mxu1 %v1180_v42 }
 0x4f5   :  { %1215 = vmatmul.bf16.vlgmr.msrb.gmra.mxu2 %v1180_v42  ;;  %1228 = vmatmul.bf16.vlgmr.msrb.gmra.mxu3 %v1180_v42 }
 0x571   :  { %v1190_v46 = vpop.f32.mrf.mxu0  ;;  %v1203_v53 = vpop.f32.mrf.mxu1 }
 0x572   :  { %v1233_v54 = vadd.f32 %v1190_v46, %v1176_v47  ;;  %v1234_v57 = vadd.f32 %v1203_v53, %v1177_v45 }
 0x574   :  { %v1237_v58 = vadd.f32 %v1233_v54, %v1994_v50  ;;  %v1238_v1 = vadd.f32 %v1234_v57, %v1996_v55 }
 0x576   :  { %v1489_v2 = vmul.f32 -1.442695, %v1237_v58  ;;  %v1490_v6 = vmul.f32 -1.442695, %v1238_v1 }
 0x578   :  { %1646 = vpow2.f32 %v1489_v2  ;;  %v1216_v19 = vpop.f32.mrf.mxu2  ;;  %v1229_v20 = vpop.f32.mrf.mxu3 }
 0x579   :  { %1648 = vpow2.f32 %v1490_v6  ;;  %v1236_v24 = vadd.f32 %v1229_v20, %v1179_v9  ;;  %v1192_v25 = vpop.f32.mrf.mxu0  ;;  %v1205_v36 = vpop.f32.mrf.mxu1  ;;  %v1235_v56 = vadd.f32 %v1216_v19, %v1178_v10 }
 0x57b   :  { %v1240_v37 = vadd.f32 %v1236_v24, %v2000_v5  ;;  %v1239_v30 = vadd.f32 %v1235_v56, %v2003_v40 }
 0x57d   :  { %v1491_v38 = vmul.f32 -1.442695, %v1240_v37 }
 0x57e   :  { %v1647_v39 = vpop.eup %1646 }
 0x57f   :  { %v1649_v44 = vpop.eup %1648  ;;  %v1244_v51 = vadd.f32 1.0, %v1647_v39  ;;  %1650 = vpow2.f32 %v1491_v38 }
 0x580   :  { %v1263_v50 = vadd.f32 1.0, %v1649_v44  ;;  %v1218_v55 = vpop.f32.mrf.mxu2  ;;  %v1231_v0 = vpop.f32.mrf.mxu3 }
 0x581   :  { %1652 = vrcp.f32 %v1244_v51  ;;  %v1256_v35 = vand.u32 2147483648, %v1244_v51  ;;  %v1254_v49 = vand.u32 2147483647, %v1244_v51  ;;  %vm1250_vm6 = vweird.f32 %v1244_v51 }
 0x582   :  { %1654 = vrcp.f32 %v1263_v50  ;;  %v1275_v43 = vand.u32 2147483648, %v1263_v50  ;;  %v1273_v60 = vand.u32 2147483647, %v1263_v50  ;;  %vm1269_vm7 = vweird.f32 %v1263_v50 }
 0x583   :  { %v1257_v40 = vor.u32 1.1754944e-38, %v1256_v35  ;;  %vm1255_vm10 = vcmp.eq.f32.partialorder %v1254_v49, 8.507059e+37 }
 0x584   :  { %v1276_v63 = vor.u32 1.1754944e-38, %v1275_v43  ;;  %vm1274_vm11 = vcmp.eq.f32.partialorder %v1273_v60, 8.507059e+37 }
 0x585   :  { %v1651_v14 = vpop.eup %1650 }
 0x586   :  { %v1283_v15 = vadd.f32 1.0, %v1651_v14 }
 0x587   :  { %v1653_v18 = vpop.eup %1652 }
 0x588   :  { %v1655_v52 = vpop.eup %1654  ;;  %v1246_v26 = vmul.f32 %v1653_v18, %v1244_v51  ;;  %1656 = vrcp.f32 %v1283_v15  ;;  %vm1251_vm4 = vweird.f32 %v1653_v18  ;;  %v1295_v32 = vand.u32 2147483648, %v1283_v15 }
 0x589   :  { %v1265_v5 = vmul.f32 %v1655_v52, %v1263_v50  ;;  %1658 = vtanh.f32 %v1239_v30  ;;  %vm1270_vm5 = vweird.f32 %v1655_v52  ;;  %vm1252_vm8 = vmor %vm1250_vm6, %vm1251_vm4  ;;  %vm1289_vm13 = vweird.f32 %v1283_v15 }
 0x58a   :  { %v1247_v11 = vsub.f32 1.0, %v1246_v26  ;;  %vm1271_vm9 = vmor %vm1269_vm7, %vm1270_vm5  ;;  %v1293_v33 = vand.u32 2147483647, %v1283_v15  ;;  %v1296_v41 = vor.u32 1.1754944e-38, %v1295_v32 }
 0x58b   :  { %v1266_v13 = vsub.f32 1.0, %v1265_v5 }
 0x58c   :  { %v1248_v27 = vmul.f32 %v1653_v18, %v1247_v11  ;;  %vm1294_vm15 = vcmp.eq.f32.partialorder %v1293_v33, 8.507059e+37 }
 0x58d   :  { %v1267_v59 = vmul.f32 %v1655_v52, %v1266_v13 }
 0x58e   :  { %v1657_v22 = vpop.eup %1656  ;;  %v1249_v23 = vadd.f32 %v1653_v18, %v1248_v27 }
 0x58f   :  { %v1268_v62 = vadd.f32 %v1655_v52, %v1267_v59  ;;  %v1285_v29 = vmul.f32 %v1657_v22, %v1283_v15  ;;  %v1659_v4 = vpop.eup %1658  ;;  %vm1290_vm12 = vweird.f32 %v1657_v22 }
 0x590   :  { %v1253_v31 = vsel %vm1252_vm8, %v1653_v18, %v1249_v23  ;;  %vm1291_vm14 = vmor %vm1289_vm13, %vm1290_vm12 }
 0x591   :  { %v1258_v48 = vsel %vm1255_vm10, %v1257_v40, %v1253_v31  ;;  %v1272_v3 = vsel %vm1271_vm9, %v1655_v52, %v1268_v62  ;;  %v1286_v7 = vsub.f32 1.0, %v1285_v29 }
 0x592   :  { %v1277_v8 = vsel %vm1274_vm11, %v1276_v63, %v1272_v3  ;;  %v1300_v12 = vmul.f32 %v1659_v4, %v1258_v48 }
 0x593   :  { %v1299_v17 = vmul.f32 %v1277_v8, %v2214_v16  ;;  %v1287_v21 = vmul.f32 %v1657_v22, %v1286_v7 }
 0x595   :  { %v1301_v61 = vadd.f32 %v1300_v12, %v1299_v17  ;;  %v1288_v28 = vadd.f32 %v1657_v22, %v1287_v21 }
 0x597   :  { %1660 = vtanh.f32 %v1301_v61  ;;  %1305 = vst [vmem:[#allocation9] sm:$0xff] %v1301_v61  ;;  %v1292_v34 = vsel %vm1291_vm14, %v1657_v22, %v1288_v28 }
 0x598   :  { %1327 = dma.vmem_to_hbm [thread:$0]  %s1323_s2, 128, %s1325_s9, [#allocation10]   ;;  %v1297_v42 = vsel %vm1294_vm15, %v1296_v41, %v1292_v34 }
 0x59d   :  { %v1661_v16 = vpop.eup %1660 }
 0x59e   :  { %v1303_v47 = vmul.f32 %v1661_v16, %v1297_v42 }
 0x5a0   :  { %1304 = vst [vmem:[#allocation8] sm:$0xff] %v1303_v47 }
 0x5a1   :  { %1316 = dma.vmem_to_hbm [thread:$0]  %s1312_s11, 128, %s1314_s13, [#allocation4]  }
 0x5a2   :  { %1786 = dma.done.wait [#allocation4], 128  }
 0x5a3   :  { %1787 = vsyncadd [#allocation4], 4294967168 }
 0x5a4   :  { %1788 = dma.done.wait [#allocation10], 128  }
 0x5a5   :  { %1789 = vsyncadd [#allocation10], 4294967168 }
 0x5a6   :  { %1336 = vsyncpa [#allocation3], 1 }
 0x5a7   :  { %1337 = vsyncpa [#allocation6], 1 }
 0x5a8   :  { %1338 = vsyncpa [#allocation4], 1 }
 0x5a9   :  { %1339 = vsyncpa [#allocation10], 1 }

</bundles_post_ra>
